<compile_context>
chip_gen: v7x
topology: tpu7x:2x2x1
jax: 0.10.0
libtpu: 0.0.40
codegen_flags: <defaults>
</compile_context>

<pallas_src>
import math
from functools import partial

import jax
import jax.numpy as jnp
from jax.experimental import pallas as pl
from jax.experimental.pallas import tpu as pltpu  # not required at this size (no scratch / manual DMA)

# ---- model hyper-parameters (consistent with TSTransformerEncoder_Fed) ----
FEAT_DIM = 4
MAX_LEN = 16
D_MODEL = 32
N_HEADS = 4
NUM_LAYERS = 2
DIM_FF = 64
BN_EPS = 1e-5
HD = D_MODEL // N_HEADS          # per-head dim

# ---- packed per-layer weight slab `wl` (L, WL_ROWS, WL_COLS): row offsets ----
WL_QKV = 0                        # rows [0, 96): in-proj weight, torch (out,in) orientation
WL_OUT = 3 * D_MODEL              # rows [96, 128): out-proj weight, x@W orientation
WL_FF1 = WL_OUT + D_MODEL         # rows [128, 160): linear1 weight, x@W orientation
WL_FF2 = WL_FF1 + D_MODEL         # rows [160, 224): linear2 weight, x@W orientation
WL_ROWS = WL_FF2 + DIM_FF         # 224
WL_COLS = 64

# ---- packed "small params" slab `vecs` (V_ROWS, 128): row offsets ----
V_WAUG = 0                        # rows [0, F+D): [w_proj^T*sqrt(d) ; I_D] augmented input proj
V_WOUTP = 40                      # rows [40, 72): output_layer weight, zero-padded to 128 lanes
V_BOUTP = 72                      # row 72: output_layer bias, zero-padded to 128 lanes
V_LAYER0 = 80                     # per-layer blocks start here
V_LSTRIDE = 24
VO_BQ, VO_BK, VO_BV = 0, 4, 8     # per-head bias rows (width HD)
VO_BOUT, VO_BFF1, VO_BFF2 = 12, 13, 14
VO_BN1G, VO_BN1B, VO_BN2G, VO_BN2B = 15, 16, 17, 18
V_ROWS = V_LAYER0 + NUM_LAYERS * V_LSTRIDE   # 128


def _gelu(x):
    # exact (erf-based) gelu, matching torch.nn.functional.gelu default
    return 0.5 * x * (1.0 + jax.lax.erf(x * (1.0 / math.sqrt(2.0))))


def _batchnorm_tokens(x, gamma, beta, eps):
    # BatchNorm1d over the token axis (batch*seq) per feature, batch statistics.
    mean = jnp.mean(x, axis=0, keepdims=True)
    xc = x - mean
    var = jnp.mean(xc * xc, axis=0, keepdims=True)   # biased variance (BN semantics)
    return xc * jax.lax.rsqrt(var + eps) * gamma + beta


# ---------------------------- fused Pallas kernel ----------------------------
def _fused_forward_kernel(xpe_ref, bias_ref, wl_ref, vecs_ref, o_ref, *, B, S, eps):
    D, H, hd, FF, F = D_MODEL, N_HEADS, HD, DIM_FF, FEAT_DIM
    N = B * S
    f32 = jnp.float32

    # project_inp(x)*sqrt(d) + b_proj*sqrt(d) + positional encoding, as ONE augmented
    # matmul: [x | pe + b*sqrt(d)] @ [[W_proj^T*sqrt(d)], [I_D]]   -> (N, D)
    w_aug = vecs_ref[V_WAUG:V_WAUG + F + D, 0:D]
    h = jnp.dot(xpe_ref[...], w_aug, preferred_element_type=f32)

    bias = bias_ref[...]                                   # (B, S, S) additive key-padding bias

    for l in range(NUM_LAYERS):
        base = V_LAYER0 + l * V_LSTRIDE

        # ---- multi-head self-attention: per-head row-sliced weights, batched einsums ----
        # (everything stays at lane offset 0; no VMEM scratch, no lane-offset extracts)
        src2 = None
        for hh in range(H):
            rq = WL_QKV + 0 * D + hh * hd
            rk = WL_QKV + 1 * D + hh * hd
            rv = WL_QKV + 2 * D + hh * hd
            wq = wl_ref[l, rq:rq + hd, 0:D]                 # (hd, D) torch (out,in) orientation
            wk = wl_ref[l, rk:rk + hd, 0:D]
            wv = wl_ref[l, rv:rv + hd, 0:D]
            bq = vecs_ref[base + VO_BQ + hh:base + VO_BQ + hh + 1, 0:hd]
            bk = vecs_ref[base + VO_BK + hh:base + VO_BK + hh + 1, 0:hd]
            bv = vecs_ref[base + VO_BV + hh:base + VO_BV + hh + 1, 0:hd]

            dn = (((1,), (1,)), ((), ()))                   # h @ w^T (contract the D axes)
            q = (jax.lax.dot_general(h, wq, dn, preferred_element_type=f32) + bq).reshape(B, S, hd)
            k = (jax.lax.dot_general(h, wk, dn, preferred_element_type=f32) + bk).reshape(B, S, hd)
            v = (jax.lax.dot_general(h, wv, dn, preferred_element_type=f32) + bv).reshape(B, S, hd)

            # scores (1/sqrt(hd) folded into wq/bq at init) + key-padding bias, softmax
            s = jnp.einsum('bqd,bkd->bqk', q, k, preferred_element_type=f32) + bias
            m = jnp.max(s, axis=-1, keepdims=True)
            p = jnp.exp(s - m)
            p = p / jnp.sum(p, axis=-1, keepdims=True)      # exact normalization
            ctx = jnp.einsum('bqk,bkd->bqd', p, v,
                             preferred_element_type=f32).reshape(N, hd)

            ro = WL_OUT + hh * hd
            wo = wl_ref[l, ro:ro + hd, 0:D]                 # this head's out-proj block (hd, D)
            part = jnp.dot(ctx, wo, preferred_element_type=f32)
            src2 = part if src2 is None else src2 + part

        src2 = src2 + vecs_ref[base + VO_BOUT:base + VO_BOUT + 1, 0:D]

        # residual + BatchNorm1 (dropout1 == identity)
        h = _batchnorm_tokens(h + src2,
                              vecs_ref[base + VO_BN1G:base + VO_BN1G + 1, 0:D],
                              vecs_ref[base + VO_BN1B:base + VO_BN1B + 1, 0:D], eps)

        # ---- feed-forward: linear1 -> gelu -> linear2, residual + BatchNorm2 ----
        w1 = wl_ref[l, WL_FF1:WL_FF1 + D, 0:FF]
        w2 = wl_ref[l, WL_FF2:WL_FF2 + FF, 0:D]
        ff = _gelu(jnp.dot(h, w1, preferred_element_type=f32)
                   + vecs_ref[base + VO_BFF1:base + VO_BFF1 + 1, 0:FF])
        ff = (jnp.dot(ff, w2, preferred_element_type=f32)
              + vecs_ref[base + VO_BFF2:base + VO_BFF2 + 1, 0:D])
        h = _batchnorm_tokens(h + ff,
                              vecs_ref[base + VO_BN2G:base + VO_BN2G + 1, 0:D],
                              vecs_ref[base + VO_BN2B:base + VO_BN2B + 1, 0:D], eps)

    # final GELU + output_layer; lane-dense (N,128)-padded store (wrapper slices to feat_dim)
    h = _gelu(h)
    out = (jnp.dot(h, vecs_ref[V_WOUTP:V_WOUTP + D, :], preferred_element_type=f32)
           + vecs_ref[V_BOUTP:V_BOUTP + 1, :])
    o_ref[...] = out.astype(o_ref.dtype)


# ---------------------------- model glue ----------------------------
def ts_transformer_encoder_fed_forward(params, X, padding_masks):
    """X: (B, S, feat_dim) float32; padding_masks: (B, S) bool (True = keep)."""
    B, S, F = X.shape
    N = B * S

    # batch-major token rows (row = b*S + s); pe already carries b_proj*sqrt(d)
    x_flat = X.reshape(N, F).astype(jnp.float32)
    pe_tok = jnp.broadcast_to(params["pe_plus"][:S][None], (B, S, D_MODEL)).reshape(N, D_MODEL)
    xpe = jnp.concatenate([x_flat, pe_tok], axis=1)                       # (N, F+D)

    # key_padding_mask (= ~padding_masks) as additive bias, pre-broadcast to (B, S, S)
    bias = jnp.where(padding_masks, 0.0, -1e30).astype(jnp.float32)
    bias = jnp.broadcast_to(bias[:, None, :], (B, S, S))

    kernel = partial(_fused_forward_kernel, B=B, S=S, eps=float(BN_EPS))

    # one grid-less pallas_call: whole working set (<0.5 MiB) is VMEM-resident.
    out_pad = pl.pallas_call(
        kernel,
        out_shape=jax.ShapeDtypeStruct((N, 128), jnp.float32),
    )(xpe, bias, params["wl"], params["vecs"])
    return out_pad[:, :FEAT_DIM].reshape(B, S, FEAT_DIM)


# ---------------------------- parameters ----------------------------
def _init_linear_torch(key, in_dim, out_dim):
    k1, k2 = jax.random.split(key)
    bound = 1.0 / math.sqrt(in_dim)
    w = jax.random.uniform(k1, (out_dim, in_dim), jnp.float32, -bound, bound)
    b = jax.random.uniform(k2, (out_dim,), jnp.float32, -bound, bound)
    return w, b          # torch Linear layout: (out_features, in_features), (out_features,)


def _fixed_pos_encoding(max_len, d_model):
    position = jnp.arange(max_len, dtype=jnp.float32)[:, None]
    div_term = jnp.exp(jnp.arange(0, d_model, 2, dtype=jnp.float32)
                       * (-math.log(10000.0) / d_model))
    pe = jnp.stack([jnp.sin(position * div_term),
                    jnp.cos(position * div_term)], axis=-1).reshape(max_len, d_model)
    return pe            # sin at even indices, cos at odd indices


def init_params(key):
    D, F, FF, H, hd, L = D_MODEL, FEAT_DIM, DIM_FF, N_HEADS, HD, NUM_LAYERS
    sqrt_d = math.sqrt(D)
    attn_scale = 1.0 / math.sqrt(hd)
    keys = jax.random.split(key, 2 + L)

    w_proj, b_proj = _init_linear_torch(keys[0], F, D)
    w_outp, b_outp = _init_linear_torch(keys[1], D, F)
    pe = _fixed_pos_encoding(MAX_LEN, D)

    # ---------- "small params" slab ----------
    vecs = jnp.zeros((V_ROWS, 128), jnp.float32)
    w_aug = jnp.concatenate([w_proj.T * sqrt_d, jnp.eye(D, dtype=jnp.float32)], axis=0)
    vecs = vecs.at[V_WAUG:V_WAUG + F + D, 0:D].set(w_aug)
    vecs = vecs.at[V_WOUTP:V_WOUTP + D, 0:F].set(w_outp.T)
    vecs = vecs.at[V_BOUTP, 0:F].set(b_outp)

    # ---------- per-layer weight slab ----------
    wl = jnp.zeros((L, WL_ROWS, WL_COLS), jnp.float32)
    raw_layers = []
    for l in range(L):
        lk = jax.random.split(keys[2 + l], 4)
        w_in, b_in = _init_linear_torch(lk[0], D, 3 * D)     # MHA in_proj (3D, D)
        w_o, b_o = _init_linear_torch(lk[1], D, D)           # MHA out_proj
        w_1, b_1 = _init_linear_torch(lk[2], D, FF)          # linear1
        w_2, b_2 = _init_linear_torch(lk[3], FF, D)          # linear2
        g1 = jnp.ones((D,), jnp.float32); be1 = jnp.zeros((D,), jnp.float32)
        g2 = jnp.ones((D,), jnp.float32); be2 = jnp.zeros((D,), jnp.float32)
        raw_layers.append(dict(w_in=w_in, b_in=b_in, w_out=w_o, b_out=b_o,
                               w_1=w_1, b_1=b_1, w_2=w_2, b_2=b_2,
                               g1=g1, be1=be1, g2=g2, be2=be2))

        # fold 1/sqrt(head_dim) into the q rows of the in-projection (weight AND bias)
        w_in_s = w_in.at[0:D, :].multiply(attn_scale)
        b_in_s = b_in.at[0:D].multiply(attn_scale)

        wl = wl.at[l, WL_QKV:WL_QKV + 3 * D, 0:D].set(w_in_s)    # torch (out,in) orientation
        wl = wl.at[l, WL_OUT:WL_OUT + D, 0:D].set(w_o.T)         # x @ W layout
        wl = wl.at[l, WL_FF1:WL_FF1 + D, 0:FF].set(w_1.T)
        wl = wl.at[l, WL_FF2:WL_FF2 + FF, 0:D].set(w_2.T)

        base = V_LAYER0 + l * V_LSTRIDE
        for hh in range(H):
            vecs = vecs.at[base + VO_BQ + hh, 0:hd].set(b_in_s[0 * D + hh * hd:0 * D + (hh + 1) * hd])
            vecs = vecs.at[base + VO_BK + hh, 0:hd].set(b_in_s[1 * D + hh * hd:1 * D + (hh + 1) * hd])
            vecs = vecs.at[base + VO_BV + hh, 0:hd].set(b_in_s[2 * D + hh * hd:2 * D + (hh + 1) * hd])
        vecs = vecs.at[base + VO_BOUT, 0:D].set(b_o)
        vecs = vecs.at[base + VO_BFF1, 0:FF].set(b_1)
        vecs = vecs.at[base + VO_BFF2, 0:D].set(b_2)
        vecs = vecs.at[base + VO_BN1G, 0:D].set(g1)
        vecs = vecs.at[base + VO_BN1B, 0:D].set(be1)
        vecs = vecs.at[base + VO_BN2G, 0:D].set(g2)
        vecs = vecs.at[base + VO_BN2B, 0:D].set(be2)

    params = dict(wl=wl, vecs=vecs,
                  pe_plus=pe + (b_proj * sqrt_d)[None, :])    # pe + project_inp bias * sqrt(d)
    raw = dict(w_proj=w_proj, b_proj=b_proj, w_outp=w_outp, b_outp=b_outp,
               pe=pe, layers=raw_layers)
    return params, raw


# ---------------------------- plain-JAX reference (validation only) ----------------------------
def reference_forward(raw, X, padding_masks):
    B, S, F = X.shape
    D, H, hd = D_MODEL, N_HEADS, HD
    h = (X.reshape(B * S, F) @ raw["w_proj"].T + raw["b_proj"]) * math.sqrt(D)
    h = h + jnp.broadcast_to(raw["pe"][:S][None], (B, S, D)).reshape(B * S, D)
    bias = jnp.where(padding_masks, 0.0, -1e30)
    for lw in raw["layers"]:
        qkv = h @ lw["w_in"].T + lw["b_in"]
        q, k, v = qkv[:, :D], qkv[:, D:2 * D], qkv[:, 2 * D:]
        q = q / math.sqrt(hd)
        batches = []
        for b in range(B):
            rows = slice(b * S, (b + 1) * S)
            heads = []
            for hh in range(H):
                cols = slice(hh * hd, (hh + 1) * hd)
                s = q[rows, cols] @ k[rows, cols].T + bias[b][None, :]
                p = jax.nn.softmax(s, axis=-1)
                heads.append(p @ v[rows, cols])
            batches.append(jnp.concatenate(heads, axis=1))
        ctx = jnp.concatenate(batches, axis=0)
        src2 = ctx @ lw["w_out"].T + lw["b_out"]
        h = _batchnorm_tokens(h + src2, lw["g1"][None, :], lw["be1"][None, :], BN_EPS)
        ff = _gelu(h @ lw["w_1"].T + lw["b_1"])
        ff = ff @ lw["w_2"].T + lw["b_2"]
        h = _batchnorm_tokens(h + ff, lw["g2"][None, :], lw["be2"][None, :], BN_EPS)
    h = _gelu(h)
    out = h @ raw["w_outp"].T + raw["b_outp"]
    return out.reshape(B, S, F)


if __name__ == "__main__":
    B, S = 2, 8
    key = jax.random.PRNGKey(0)
    kx, kp = jax.random.split(key)
    X = jax.random.normal(kx, (B, S, FEAT_DIM), dtype=jnp.float32)
    padding_masks = jnp.ones((B, S), dtype=bool).at[1, 6:].set(False)
    params, raw = init_params(kp)

    fwd = jax.jit(ts_transformer_encoder_fed_forward)
    out = fwd(params, X, padding_masks)
    out = jax.block_until_ready(out)
    assert out.shape == (B, S, FEAT_DIM), out.shape
    assert bool(jnp.all(jnp.isfinite(out)))

    ref = reference_forward(raw, X, padding_masks)
    max_err = float(jnp.max(jnp.abs(out - ref)))
    assert max_err < 2e-3, f"kernel/reference mismatch: max abs err = {max_err}"
    print("KERNEL_OK")
</pallas_src>

<mosaic_0001>
module attributes {stable_mosaic.version = 11 : i64} {
  func.func @_fused_forward_kernel(%arg0: memref<16x36xf32, #tpu.memory_space<vmem>>, %arg1: memref<2x8x8xf32, #tpu.memory_space<vmem>>, %arg2: memref<2x224x64xf32, #tpu.memory_space<vmem>>, %arg3: memref<128x128xf32, #tpu.memory_space<vmem>>, %arg4: memref<16x128xf32, #tpu.memory_space<vmem>>) attributes {dimension_semantics = [], scalar_prefetch = 0 : i64, scratch_operands = 0 : i64, tpu.core_type = #tpu.core_type<tc>} {
    %c0 = arith.constant 0 : index
    %c0_0 = arith.constant 0 : index
    %0 = vector.load %arg3[%c0, %c0_0] : memref<128x128xf32, #tpu.memory_space<vmem>>, vector<36x32xf32>
    %c0_1 = arith.constant 0 : index
    %c0_2 = arith.constant 0 : index
    %1 = vector.load %arg0[%c0_1, %c0_2] : memref<16x36xf32, #tpu.memory_space<vmem>>, vector<16x36xf32>
    %cst = arith.constant dense<0.000000e+00> : vector<16x32xf32>
    %2 = tpu.matmul %1, %0, %cst {dimension_numbers = #tpu.dot_dimension_numbers<[1], [0], [0], [1], [0, 0, 1, 1], [], []>} : vector<16x36xf32>, vector<36x32xf32>, vector<16x32xf32> -> vector<16x32xf32>
    %c0_3 = arith.constant 0 : index
    %c0_4 = arith.constant 0 : index
    %c0_5 = arith.constant 0 : index
    %3 = vector.load %arg1[%c0_3, %c0_4, %c0_5] : memref<2x8x8xf32, #tpu.memory_space<vmem>>, vector<2x8x8xf32>
    %c0_6 = arith.constant 0 : index
    %c0_7 = arith.constant 0 : index
    %c0_8 = arith.constant 0 : index
    %4 = vector.load %arg2[%c0_6, %c0_7, %c0_8] : memref<2x224x64xf32, #tpu.memory_space<vmem>>, vector<1x8x32xf32>
    %5 = vector.shape_cast %4 : vector<1x8x32xf32> to vector<8x32xf32>
    %c0_9 = arith.constant 0 : index
    %c32 = arith.constant 32 : index
    %c0_10 = arith.constant 0 : index
    %6 = vector.load %arg2[%c0_9, %c32, %c0_10] : memref<2x224x64xf32, #tpu.memory_space<vmem>>, vector<1x8x32xf32>
    %7 = vector.shape_cast %6 : vector<1x8x32xf32> to vector<8x32xf32>
    %c0_11 = arith.constant 0 : index
    %c64 = arith.constant 64 : index
    %c0_12 = arith.constant 0 : index
    %8 = vector.load %arg2[%c0_11, %c64, %c0_12] : memref<2x224x64xf32, #tpu.memory_space<vmem>>, vector<1x8x32xf32>
    %9 = vector.shape_cast %8 : vector<1x8x32xf32> to vector<8x32xf32>
    %c80 = arith.constant 80 : index
    %c0_13 = arith.constant 0 : index
    %10 = vector.load %arg3[%c80, %c0_13] : memref<128x128xf32, #tpu.memory_space<vmem>>, vector<1x8xf32>
    %c84 = arith.constant 84 : index
    %c0_14 = arith.constant 0 : index
    %11 = vector.load %arg3[%c84, %c0_14] : memref<128x128xf32, #tpu.memory_space<vmem>>, vector<1x8xf32>
    %c88 = arith.constant 88 : index
    %c0_15 = arith.constant 0 : index
    %12 = vector.load %arg3[%c88, %c0_15] : memref<128x128xf32, #tpu.memory_space<vmem>>, vector<1x8xf32>
    %cst_16 = arith.constant dense<0.000000e+00> : vector<16x8xf32>
    %13 = tpu.matmul %2, %5, %cst_16 {dimension_numbers = #tpu.dot_dimension_numbers<[1], [1], [0], [0], [0, 0, 1, 0], [], []>} : vector<16x32xf32>, vector<8x32xf32>, vector<16x8xf32> -> vector<16x8xf32>
    %14 = vector.broadcast %10 : vector<1x8xf32> to vector<16x8xf32>
    %15 = arith.addf %13, %14 : vector<16x8xf32>
    %16 = vector.shape_cast %15 : vector<16x8xf32> to vector<2x8x8xf32>
    %cst_17 = arith.constant dense<0.000000e+00> : vector<16x8xf32>
    %17 = tpu.matmul %2, %7, %cst_17 {dimension_numbers = #tpu.dot_dimension_numbers<[1], [1], [0], [0], [0, 0, 1, 0], [], []>} : vector<16x32xf32>, vector<8x32xf32>, vector<16x8xf32> -> vector<16x8xf32>
    %18 = vector.broadcast %11 : vector<1x8xf32> to vector<16x8xf32>
    %19 = arith.addf %17, %18 : vector<16x8xf32>
    %20 = vector.shape_cast %19 : vector<16x8xf32> to vector<2x8x8xf32>
    %cst_18 = arith.constant dense<0.000000e+00> : vector<16x8xf32>
    %21 = tpu.matmul %2, %9, %cst_18 {dimension_numbers = #tpu.dot_dimension_numbers<[1], [1], [0], [0], [0, 0, 1, 0], [], []>} : vector<16x32xf32>, vector<8x32xf32>, vector<16x8xf32> -> vector<16x8xf32>
    %22 = vector.broadcast %12 : vector<1x8xf32> to vector<16x8xf32>
    %23 = arith.addf %21, %22 : vector<16x8xf32>
    %24 = vector.shape_cast %23 : vector<16x8xf32> to vector<2x8x8xf32>
    "tpu.trace_start"() <{level = 10 : i32, message = "bqd,bkd->bqk"}> : () -> ()
    %cst_19 = arith.constant dense<0.000000e+00> : vector<2x8x8xf32>
    %25 = tpu.matmul %16, %20, %cst_19 {dimension_numbers = #tpu.dot_dimension_numbers<[2], [2], [1], [1], [0, 0, 0, 1, 1, 1], [0], [0]>} : vector<2x8x8xf32>, vector<2x8x8xf32>, vector<2x8x8xf32> -> vector<2x8x8xf32>
    "tpu.trace_stop"() : () -> ()
    %26 = arith.addf %25, %3 : vector<2x8x8xf32>
    %cst_20 = arith.constant dense<0xFF800000> : vector<2x8xf32>
    %27 = vector.multi_reduction <maximumf>, %26, %cst_20 [2] : vector<2x8x8xf32> to vector<2x8xf32>
    %28 = vector.shape_cast %27 : vector<2x8xf32> to vector<2x8x1xf32>
    %29 = vector.broadcast %28 : vector<2x8x1xf32> to vector<2x8x8xf32>
    %30 = arith.subf %26, %29 : vector<2x8x8xf32>
    %31 = math.exp %30 : vector<2x8x8xf32>
    %cst_21 = arith.constant dense<0.000000e+00> : vector<2x8xf32>
    %32 = vector.multi_reduction <add>, %31, %cst_21 [2] : vector<2x8x8xf32> to vector<2x8xf32>
    %33 = vector.shape_cast %32 : vector<2x8xf32> to vector<2x8x1xf32>
    %34 = vector.broadcast %33 : vector<2x8x1xf32> to vector<2x8x8xf32>
    %35 = arith.divf %31, %34 : vector<2x8x8xf32>
    "tpu.trace_start"() <{level = 10 : i32, message = "bqk,bkd->bqd"}> : () -> ()
    %cst_22 = arith.constant dense<0.000000e+00> : vector<2x8x8xf32>
    %36 = tpu.matmul %35, %24, %cst_22 {dimension_numbers = #tpu.dot_dimension_numbers<[2], [1], [1], [2], [0, 0, 0, 1, 1, 2], [0], [0]>} : vector<2x8x8xf32>, vector<2x8x8xf32>, vector<2x8x8xf32> -> vector<2x8x8xf32>
    "tpu.trace_stop"() : () -> ()
    %37 = vector.shape_cast %36 : vector<2x8x8xf32> to vector<16x8xf32>
    %c0_23 = arith.constant 0 : index
    %c96 = arith.constant 96 : index
    %c0_24 = arith.constant 0 : index
    %38 = vector.load %arg2[%c0_23, %c96, %c0_24] : memref<2x224x64xf32, #tpu.memory_space<vmem>>, vector<1x8x32xf32>
    %39 = vector.shape_cast %38 : vector<1x8x32xf32> to vector<8x32xf32>
    %cst_25 = arith.constant dense<0.000000e+00> : vector<16x32xf32>
    %40 = tpu.matmul %37, %39, %cst_25 {dimension_numbers = #tpu.dot_dimension_numbers<[1], [0], [0], [1], [0, 0, 1, 1], [], []>} : vector<16x8xf32>, vector<8x32xf32>, vector<16x32xf32> -> vector<16x32xf32>
    %c0_26 = arith.constant 0 : index
    %c8 = arith.constant 8 : index
    %c0_27 = arith.constant 0 : index
    %41 = vector.load %arg2[%c0_26, %c8, %c0_27] : memref<2x224x64xf32, #tpu.memory_space<vmem>>, vector<1x8x32xf32>
    %42 = vector.shape_cast %41 : vector<1x8x32xf32> to vector<8x32xf32>
    %c0_28 = arith.constant 0 : index
    %c40 = arith.constant 40 : index
    %c0_29 = arith.constant 0 : index
    %43 = vector.load %arg2[%c0_28, %c40, %c0_29] : memref<2x224x64xf32, #tpu.memory_space<vmem>>, vector<1x8x32xf32>
    %44 = vector.shape_cast %43 : vector<1x8x32xf32> to vector<8x32xf32>
    %c0_30 = arith.constant 0 : index
    %c72 = arith.constant 72 : index
    %c0_31 = arith.constant 0 : index
    %45 = vector.load %arg2[%c0_30, %c72, %c0_31] : memref<2x224x64xf32, #tpu.memory_space<vmem>>, vector<1x8x32xf32>
    %46 = vector.shape_cast %45 : vector<1x8x32xf32> to vector<8x32xf32>
    %c81 = arith.constant 81 : index
    %c0_32 = arith.constant 0 : index
    %47 = vector.load %arg3[%c81, %c0_32] : memref<128x128xf32, #tpu.memory_space<vmem>>, vector<1x8xf32>
    %c85 = arith.constant 85 : index
    %c0_33 = arith.constant 0 : index
    %48 = vector.load %arg3[%c85, %c0_33] : memref<128x128xf32, #tpu.memory_space<vmem>>, vector<1x8xf32>
    %c89 = arith.constant 89 : index
    %c0_34 = arith.constant 0 : index
    %49 = vector.load %arg3[%c89, %c0_34] : memref<128x128xf32, #tpu.memory_space<vmem>>, vector<1x8xf32>
    %cst_35 = arith.constant dense<0.000000e+00> : vector<16x8xf32>
    %50 = tpu.matmul %2, %42, %cst_35 {dimension_numbers = #tpu.dot_dimension_numbers<[1], [1], [0], [0], [0, 0, 1, 0], [], []>} : vector<16x32xf32>, vector<8x32xf32>, vector<16x8xf32> -> vector<16x8xf32>
    %51 = vector.broadcast %47 : vector<1x8xf32> to vector<16x8xf32>
    %52 = arith.addf %50, %51 : vector<16x8xf32>
    %53 = vector.shape_cast %52 : vector<16x8xf32> to vector<2x8x8xf32>
    %cst_36 = arith.constant dense<0.000000e+00> : vector<16x8xf32>
    %54 = tpu.matmul %2, %44, %cst_36 {dimension_numbers = #tpu.dot_dimension_numbers<[1], [1], [0], [0], [0, 0, 1, 0], [], []>} : vector<16x32xf32>, vector<8x32xf32>, vector<16x8xf32> -> vector<16x8xf32>
    %55 = vector.broadcast %48 : vector<1x8xf32> to vector<16x8xf32>
    %56 = arith.addf %54, %55 : vector<16x8xf32>
    %57 = vector.shape_cast %56 : vector<16x8xf32> to vector<2x8x8xf32>
    %cst_37 = arith.constant dense<0.000000e+00> : vector<16x8xf32>
    %58 = tpu.matmul %2, %46, %cst_37 {dimension_numbers = #tpu.dot_dimension_numbers<[1], [1], [0], [0], [0, 0, 1, 0], [], []>} : vector<16x32xf32>, vector<8x32xf32>, vector<16x8xf32> -> vector<16x8xf32>
    %59 = vector.broadcast %49 : vector<1x8xf32> to vector<16x8xf32>
    %60 = arith.addf %58, %59 : vector<16x8xf32>
    %61 = vector.shape_cast %60 : vector<16x8xf32> to vector<2x8x8xf32>
    "tpu.trace_start"() <{level = 10 : i32, message = "bqd,bkd->bqk"}> : () -> ()
    %cst_38 = arith.constant dense<0.000000e+00> : vector<2x8x8xf32>
    %62 = tpu.matmul %53, %57, %cst_38 {dimension_numbers = #tpu.dot_dimension_numbers<[2], [2], [1], [1], [0, 0, 0, 1, 1, 1], [0], [0]>} : vector<2x8x8xf32>, vector<2x8x8xf32>, vector<2x8x8xf32> -> vector<2x8x8xf32>
    "tpu.trace_stop"() : () -> ()
    %63 = arith.addf %62, %3 : vector<2x8x8xf32>
    %cst_39 = arith.constant dense<0xFF800000> : vector<2x8xf32>
    %64 = vector.multi_reduction <maximumf>, %63, %cst_39 [2] : vector<2x8x8xf32> to vector<2x8xf32>
    %65 = vector.shape_cast %64 : vector<2x8xf32> to vector<2x8x1xf32>
    %66 = vector.broadcast %65 : vector<2x8x1xf32> to vector<2x8x8xf32>
    %67 = arith.subf %63, %66 : vector<2x8x8xf32>
    %68 = math.exp %67 : vector<2x8x8xf32>
    %cst_40 = arith.constant dense<0.000000e+00> : vector<2x8xf32>
    %69 = vector.multi_reduction <add>, %68, %cst_40 [2] : vector<2x8x8xf32> to vector<2x8xf32>
    %70 = vector.shape_cast %69 : vector<2x8xf32> to vector<2x8x1xf32>
    %71 = vector.broadcast %70 : vector<2x8x1xf32> to vector<2x8x8xf32>
    %72 = arith.divf %68, %71 : vector<2x8x8xf32>
    "tpu.trace_start"() <{level = 10 : i32, message = "bqk,bkd->bqd"}> : () -> ()
    %cst_41 = arith.constant dense<0.000000e+00> : vector<2x8x8xf32>
    %73 = tpu.matmul %72, %61, %cst_41 {dimension_numbers = #tpu.dot_dimension_numbers<[2], [1], [1], [2], [0, 0, 0, 1, 1, 2], [0], [0]>} : vector<2x8x8xf32>, vector<2x8x8xf32>, vector<2x8x8xf32> -> vector<2x8x8xf32>
    "tpu.trace_stop"() : () -> ()
    %74 = vector.shape_cast %73 : vector<2x8x8xf32> to vector<16x8xf32>
    %c0_42 = arith.constant 0 : index
    %c104 = arith.constant 104 : index
    %c0_43 = arith.constant 0 : index
    %75 = vector.load %arg2[%c0_42, %c104, %c0_43] : memref<2x224x64xf32, #tpu.memory_space<vmem>>, vector<1x8x32xf32>
    %76 = vector.shape_cast %75 : vector<1x8x32xf32> to vector<8x32xf32>
    %cst_44 = arith.constant dense<0.000000e+00> : vector<16x32xf32>
    %77 = tpu.matmul %74, %76, %cst_44 {dimension_numbers = #tpu.dot_dimension_numbers<[1], [0], [0], [1], [0, 0, 1, 1], [], []>} : vector<16x8xf32>, vector<8x32xf32>, vector<16x32xf32> -> vector<16x32xf32>
    %78 = arith.addf %40, %77 : vector<16x32xf32>
    %c0_45 = arith.constant 0 : index
    %c16 = arith.constant 16 : index
    %c0_46 = arith.constant 0 : index
    %79 = vector.load %arg2[%c0_45, %c16, %c0_46] : memref<2x224x64xf32, #tpu.memory_space<vmem>>, vector<1x8x32xf32>
    %80 = vector.shape_cast %79 : vector<1x8x32xf32> to vector<8x32xf32>
    %c0_47 = arith.constant 0 : index
    %c48 = arith.constant 48 : index
    %c0_48 = arith.constant 0 : index
    %81 = vector.load %arg2[%c0_47, %c48, %c0_48] : memref<2x224x64xf32, #tpu.memory_space<vmem>>, vector<1x8x32xf32>
    %82 = vector.shape_cast %81 : vector<1x8x32xf32> to vector<8x32xf32>
    %c0_49 = arith.constant 0 : index
    %c80_50 = arith.constant 80 : index
    %c0_51 = arith.constant 0 : index
    %83 = vector.load %arg2[%c0_49, %c80_50, %c0_51] : memref<2x224x64xf32, #tpu.memory_space<vmem>>, vector<1x8x32xf32>
    %84 = vector.shape_cast %83 : vector<1x8x32xf32> to vector<8x32xf32>
    %c82 = arith.constant 82 : index
    %c0_52 = arith.constant 0 : index
    %85 = vector.load %arg3[%c82, %c0_52] : memref<128x128xf32, #tpu.memory_space<vmem>>, vector<1x8xf32>
    %c86 = arith.constant 86 : index
    %c0_53 = arith.constant 0 : index
    %86 = vector.load %arg3[%c86, %c0_53] : memref<128x128xf32, #tpu.memory_space<vmem>>, vector<1x8xf32>
    %c90 = arith.constant 90 : index
    %c0_54 = arith.constant 0 : index
    %87 = vector.load %arg3[%c90, %c0_54] : memref<128x128xf32, #tpu.memory_space<vmem>>, vector<1x8xf32>
    %cst_55 = arith.constant dense<0.000000e+00> : vector<16x8xf32>
    %88 = tpu.matmul %2, %80, %cst_55 {dimension_numbers = #tpu.dot_dimension_numbers<[1], [1], [0], [0], [0, 0, 1, 0], [], []>} : vector<16x32xf32>, vector<8x32xf32>, vector<16x8xf32> -> vector<16x8xf32>
    %89 = vector.broadcast %85 : vector<1x8xf32> to vector<16x8xf32>
    %90 = arith.addf %88, %89 : vector<16x8xf32>
    %91 = vector.shape_cast %90 : vector<16x8xf32> to vector<2x8x8xf32>
    %cst_56 = arith.constant dense<0.000000e+00> : vector<16x8xf32>
    %92 = tpu.matmul %2, %82, %cst_56 {dimension_numbers = #tpu.dot_dimension_numbers<[1], [1], [0], [0], [0, 0, 1, 0], [], []>} : vector<16x32xf32>, vector<8x32xf32>, vector<16x8xf32> -> vector<16x8xf32>
    %93 = vector.broadcast %86 : vector<1x8xf32> to vector<16x8xf32>
    %94 = arith.addf %92, %93 : vector<16x8xf32>
    %95 = vector.shape_cast %94 : vector<16x8xf32> to vector<2x8x8xf32>
    %cst_57 = arith.constant dense<0.000000e+00> : vector<16x8xf32>
    %96 = tpu.matmul %2, %84, %cst_57 {dimension_numbers = #tpu.dot_dimension_numbers<[1], [1], [0], [0], [0, 0, 1, 0], [], []>} : vector<16x32xf32>, vector<8x32xf32>, vector<16x8xf32> -> vector<16x8xf32>
    %97 = vector.broadcast %87 : vector<1x8xf32> to vector<16x8xf32>
    %98 = arith.addf %96, %97 : vector<16x8xf32>
    %99 = vector.shape_cast %98 : vector<16x8xf32> to vector<2x8x8xf32>
    "tpu.trace_start"() <{level = 10 : i32, message = "bqd,bkd->bqk"}> : () -> ()
    %cst_58 = arith.constant dense<0.000000e+00> : vector<2x8x8xf32>
    %100 = tpu.matmul %91, %95, %cst_58 {dimension_numbers = #tpu.dot_dimension_numbers<[2], [2], [1], [1], [0, 0, 0, 1, 1, 1], [0], [0]>} : vector<2x8x8xf32>, vector<2x8x8xf32>, vector<2x8x8xf32> -> vector<2x8x8xf32>
    "tpu.trace_stop"() : () -> ()
    %101 = arith.addf %100, %3 : vector<2x8x8xf32>
    %cst_59 = arith.constant dense<0xFF800000> : vector<2x8xf32>
    %102 = vector.multi_reduction <maximumf>, %101, %cst_59 [2] : vector<2x8x8xf32> to vector<2x8xf32>
    %103 = vector.shape_cast %102 : vector<2x8xf32> to vector<2x8x1xf32>
    %104 = vector.broadcast %103 : vector<2x8x1xf32> to vector<2x8x8xf32>
    %105 = arith.subf %101, %104 : vector<2x8x8xf32>
    %106 = math.exp %105 : vector<2x8x8xf32>
    %cst_60 = arith.constant dense<0.000000e+00> : vector<2x8xf32>
    %107 = vector.multi_reduction <add>, %106, %cst_60 [2] : vector<2x8x8xf32> to vector<2x8xf32>
    %108 = vector.shape_cast %107 : vector<2x8xf32> to vector<2x8x1xf32>
    %109 = vector.broadcast %108 : vector<2x8x1xf32> to vector<2x8x8xf32>
    %110 = arith.divf %106, %109 : vector<2x8x8xf32>
    "tpu.trace_start"() <{level = 10 : i32, message = "bqk,bkd->bqd"}> : () -> ()
    %cst_61 = arith.constant dense<0.000000e+00> : vector<2x8x8xf32>
    %111 = tpu.matmul %110, %99, %cst_61 {dimension_numbers = #tpu.dot_dimension_numbers<[2], [1], [1], [2], [0, 0, 0, 1, 1, 2], [0], [0]>} : vector<2x8x8xf32>, vector<2x8x8xf32>, vector<2x8x8xf32> -> vector<2x8x8xf32>
    "tpu.trace_stop"() : () -> ()
    %112 = vector.shape_cast %111 : vector<2x8x8xf32> to vector<16x8xf32>
    %c0_62 = arith.constant 0 : index
    %c112 = arith.constant 112 : index
    %c0_63 = arith.constant 0 : index
    %113 = vector.load %arg2[%c0_62, %c112, %c0_63] : memref<2x224x64xf32, #tpu.memory_space<vmem>>, vector<1x8x32xf32>
    %114 = vector.shape_cast %113 : vector<1x8x32xf32> to vector<8x32xf32>
    %cst_64 = arith.constant dense<0.000000e+00> : vector<16x32xf32>
    %115 = tpu.matmul %112, %114, %cst_64 {dimension_numbers = #tpu.dot_dimension_numbers<[1], [0], [0], [1], [0, 0, 1, 1], [], []>} : vector<16x8xf32>, vector<8x32xf32>, vector<16x32xf32> -> vector<16x32xf32>
    %116 = arith.addf %78, %115 : vector<16x32xf32>
    %c0_65 = arith.constant 0 : index
    %c24 = arith.constant 24 : index
    %c0_66 = arith.constant 0 : index
    %117 = vector.load %arg2[%c0_65, %c24, %c0_66] : memref<2x224x64xf32, #tpu.memory_space<vmem>>, vector<1x8x32xf32>
    %118 = vector.shape_cast %117 : vector<1x8x32xf32> to vector<8x32xf32>
    %c0_67 = arith.constant 0 : index
    %c56 = arith.constant 56 : index
    %c0_68 = arith.constant 0 : index
    %119 = vector.load %arg2[%c0_67, %c56, %c0_68] : memref<2x224x64xf32, #tpu.memory_space<vmem>>, vector<1x8x32xf32>
    %120 = vector.shape_cast %119 : vector<1x8x32xf32> to vector<8x32xf32>
    %c0_69 = arith.constant 0 : index
    %c88_70 = arith.constant 88 : index
    %c0_71 = arith.constant 0 : index
    %121 = vector.load %arg2[%c0_69, %c88_70, %c0_71] : memref<2x224x64xf32, #tpu.memory_space<vmem>>, vector<1x8x32xf32>
    %122 = vector.shape_cast %121 : vector<1x8x32xf32> to vector<8x32xf32>
    %c83 = arith.constant 83 : index
    %c0_72 = arith.constant 0 : index
    %123 = vector.load %arg3[%c83, %c0_72] : memref<128x128xf32, #tpu.memory_space<vmem>>, vector<1x8xf32>
    %c87 = arith.constant 87 : index
    %c0_73 = arith.constant 0 : index
    %124 = vector.load %arg3[%c87, %c0_73] : memref<128x128xf32, #tpu.memory_space<vmem>>, vector<1x8xf32>
    %c91 = arith.constant 91 : index
    %c0_74 = arith.constant 0 : index
    %125 = vector.load %arg3[%c91, %c0_74] : memref<128x128xf32, #tpu.memory_space<vmem>>, vector<1x8xf32>
    %cst_75 = arith.constant dense<0.000000e+00> : vector<16x8xf32>
    %126 = tpu.matmul %2, %118, %cst_75 {dimension_numbers = #tpu.dot_dimension_numbers<[1], [1], [0], [0], [0, 0, 1, 0], [], []>} : vector<16x32xf32>, vector<8x32xf32>, vector<16x8xf32> -> vector<16x8xf32>
    %127 = vector.broadcast %123 : vector<1x8xf32> to vector<16x8xf32>
    %128 = arith.addf %126, %127 : vector<16x8xf32>
    %129 = vector.shape_cast %128 : vector<16x8xf32> to vector<2x8x8xf32>
    %cst_76 = arith.constant dense<0.000000e+00> : vector<16x8xf32>
    %130 = tpu.matmul %2, %120, %cst_76 {dimension_numbers = #tpu.dot_dimension_numbers<[1], [1], [0], [0], [0, 0, 1, 0], [], []>} : vector<16x32xf32>, vector<8x32xf32>, vector<16x8xf32> -> vector<16x8xf32>
    %131 = vector.broadcast %124 : vector<1x8xf32> to vector<16x8xf32>
    %132 = arith.addf %130, %131 : vector<16x8xf32>
    %133 = vector.shape_cast %132 : vector<16x8xf32> to vector<2x8x8xf32>
    %cst_77 = arith.constant dense<0.000000e+00> : vector<16x8xf32>
    %134 = tpu.matmul %2, %122, %cst_77 {dimension_numbers = #tpu.dot_dimension_numbers<[1], [1], [0], [0], [0, 0, 1, 0], [], []>} : vector<16x32xf32>, vector<8x32xf32>, vector<16x8xf32> -> vector<16x8xf32>
    %135 = vector.broadcast %125 : vector<1x8xf32> to vector<16x8xf32>
    %136 = arith.addf %134, %135 : vector<16x8xf32>
    %137 = vector.shape_cast %136 : vector<16x8xf32> to vector<2x8x8xf32>
    "tpu.trace_start"() <{level = 10 : i32, message = "bqd,bkd->bqk"}> : () -> ()
    %cst_78 = arith.constant dense<0.000000e+00> : vector<2x8x8xf32>
    %138 = tpu.matmul %129, %133, %cst_78 {dimension_numbers = #tpu.dot_dimension_numbers<[2], [2], [1], [1], [0, 0, 0, 1, 1, 1], [0], [0]>} : vector<2x8x8xf32>, vector<2x8x8xf32>, vector<2x8x8xf32> -> vector<2x8x8xf32>
    "tpu.trace_stop"() : () -> ()
    %139 = arith.addf %138, %3 : vector<2x8x8xf32>
    %cst_79 = arith.constant dense<0xFF800000> : vector<2x8xf32>
    %140 = vector.multi_reduction <maximumf>, %139, %cst_79 [2] : vector<2x8x8xf32> to vector<2x8xf32>
    %141 = vector.shape_cast %140 : vector<2x8xf32> to vector<2x8x1xf32>
    %142 = vector.broadcast %141 : vector<2x8x1xf32> to vector<2x8x8xf32>
    %143 = arith.subf %139, %142 : vector<2x8x8xf32>
    %144 = math.exp %143 : vector<2x8x8xf32>
    %cst_80 = arith.constant dense<0.000000e+00> : vector<2x8xf32>
    %145 = vector.multi_reduction <add>, %144, %cst_80 [2] : vector<2x8x8xf32> to vector<2x8xf32>
    %146 = vector.shape_cast %145 : vector<2x8xf32> to vector<2x8x1xf32>
    %147 = vector.broadcast %146 : vector<2x8x1xf32> to vector<2x8x8xf32>
    %148 = arith.divf %144, %147 : vector<2x8x8xf32>
    "tpu.trace_start"() <{level = 10 : i32, message = "bqk,bkd->bqd"}> : () -> ()
    %cst_81 = arith.constant dense<0.000000e+00> : vector<2x8x8xf32>
    %149 = tpu.matmul %148, %137, %cst_81 {dimension_numbers = #tpu.dot_dimension_numbers<[2], [1], [1], [2], [0, 0, 0, 1, 1, 2], [0], [0]>} : vector<2x8x8xf32>, vector<2x8x8xf32>, vector<2x8x8xf32> -> vector<2x8x8xf32>
    "tpu.trace_stop"() : () -> ()
    %150 = vector.shape_cast %149 : vector<2x8x8xf32> to vector<16x8xf32>
    %c0_82 = arith.constant 0 : index
    %c120 = arith.constant 120 : index
    %c0_83 = arith.constant 0 : index
    %151 = vector.load %arg2[%c0_82, %c120, %c0_83] : memref<2x224x64xf32, #tpu.memory_space<vmem>>, vector<1x8x32xf32>
    %152 = vector.shape_cast %151 : vector<1x8x32xf32> to vector<8x32xf32>
    %cst_84 = arith.constant dense<0.000000e+00> : vector<16x32xf32>
    %153 = tpu.matmul %150, %152, %cst_84 {dimension_numbers = #tpu.dot_dimension_numbers<[1], [0], [0], [1], [0, 0, 1, 1], [], []>} : vector<16x8xf32>, vector<8x32xf32>, vector<16x32xf32> -> vector<16x32xf32>
    %154 = arith.addf %116, %153 : vector<16x32xf32>
    %c92 = arith.constant 92 : index
    %c0_85 = arith.constant 0 : index
    %155 = vector.load %arg3[%c92, %c0_85] : memref<128x128xf32, #tpu.memory_space<vmem>>, vector<1x32xf32>
    %156 = vector.broadcast %155 : vector<1x32xf32> to vector<16x32xf32>
    %157 = arith.addf %154, %156 : vector<16x32xf32>
    %158 = arith.addf %2, %157 : vector<16x32xf32>
    %c95 = arith.constant 95 : index
    %c0_86 = arith.constant 0 : index
    %159 = vector.load %arg3[%c95, %c0_86] : memref<128x128xf32, #tpu.memory_space<vmem>>, vector<1x32xf32>
    %c96_87 = arith.constant 96 : index
    %c0_88 = arith.constant 0 : index
    %160 = vector.load %arg3[%c96_87, %c0_88] : memref<128x128xf32, #tpu.memory_space<vmem>>, vector<1x32xf32>
    %cst_89 = arith.constant dense<0.000000e+00> : vector<32xf32>
    %161 = vector.multi_reduction <add>, %158, %cst_89 [0] : vector<16x32xf32> to vector<32xf32>
    %162 = vector.shape_cast %161 : vector<32xf32> to vector<1x32xf32>
    %cst_90 = arith.constant 1.600000e+01 : f32
    %163 = vector.broadcast %cst_90 : f32 to vector<1x32xf32>
    %164 = arith.divf %162, %163 : vector<1x32xf32>
    %165 = vector.broadcast %164 : vector<1x32xf32> to vector<16x32xf32>
    %166 = arith.subf %158, %165 : vector<16x32xf32>
    %167 = arith.mulf %166, %166 : vector<16x32xf32>
    %cst_91 = arith.constant dense<0.000000e+00> : vector<32xf32>
    %168 = vector.multi_reduction <add>, %167, %cst_91 [0] : vector<16x32xf32> to vector<32xf32>
    %169 = vector.shape_cast %168 : vector<32xf32> to vector<1x32xf32>
    %cst_92 = arith.constant 1.600000e+01 : f32
    %170 = vector.broadcast %cst_92 : f32 to vector<1x32xf32>
    %171 = arith.divf %169, %170 : vector<1x32xf32>
    %cst_93 = arith.constant 9.99999974E-6 : f32
    %172 = vector.broadcast %cst_93 : f32 to vector<1x32xf32>
    %173 = arith.addf %171, %172 : vector<1x32xf32>
    %174 = math.rsqrt %173 : vector<1x32xf32>
    %175 = vector.broadcast %174 : vector<1x32xf32> to vector<16x32xf32>
    %176 = arith.mulf %166, %175 : vector<16x32xf32>
    %177 = vector.broadcast %159 : vector<1x32xf32> to vector<16x32xf32>
    %178 = arith.mulf %176, %177 : vector<16x32xf32>
    %179 = vector.broadcast %160 : vector<1x32xf32> to vector<16x32xf32>
    %180 = arith.addf %178, %179 : vector<16x32xf32>
    %c0_94 = arith.constant 0 : index
    %c128 = arith.constant 128 : index
    %c0_95 = arith.constant 0 : index
    %181 = vector.load %arg2[%c0_94, %c128, %c0_95] : memref<2x224x64xf32, #tpu.memory_space<vmem>>, vector<1x32x64xf32>
    %182 = vector.shape_cast %181 : vector<1x32x64xf32> to vector<32x64xf32>
    %c0_96 = arith.constant 0 : index
    %c160 = arith.constant 160 : index
    %c0_97 = arith.constant 0 : index
    %183 = vector.load %arg2[%c0_96, %c160, %c0_97] : memref<2x224x64xf32, #tpu.memory_space<vmem>>, vector<1x64x32xf32>
    %184 = vector.shape_cast %183 : vector<1x64x32xf32> to vector<64x32xf32>
    %cst_98 = arith.constant dense<0.000000e+00> : vector<16x64xf32>
    %185 = tpu.matmul %180, %182, %cst_98 {dimension_numbers = #tpu.dot_dimension_numbers<[1], [0], [0], [1], [0, 0, 1, 1], [], []>} : vector<16x32xf32>, vector<32x64xf32>, vector<16x64xf32> -> vector<16x64xf32>
    %c93 = arith.constant 93 : index
    %c0_99 = arith.constant 0 : index
    %186 = vector.load %arg3[%c93, %c0_99] : memref<128x128xf32, #tpu.memory_space<vmem>>, vector<1x64xf32>
    %187 = vector.broadcast %186 : vector<1x64xf32> to vector<16x64xf32>
    %188 = arith.addf %185, %187 : vector<16x64xf32>
    %cst_100 = arith.constant 5.000000e-01 : f32
    %189 = vector.broadcast %cst_100 : f32 to vector<16x64xf32>
    %190 = arith.mulf %189, %188 : vector<16x64xf32>
    %cst_101 = arith.constant 0.707106769 : f32
    %191 = vector.broadcast %cst_101 : f32 to vector<16x64xf32>
    %192 = arith.mulf %188, %191 : vector<16x64xf32>
    %193 = math.erf %192 : vector<16x64xf32>
    %cst_102 = arith.constant 1.000000e+00 : f32
    %194 = vector.broadcast %cst_102 : f32 to vector<16x64xf32>
    %195 = arith.addf %194, %193 : vector<16x64xf32>
    %196 = arith.mulf %190, %195 : vector<16x64xf32>
    %cst_103 = arith.constant dense<0.000000e+00> : vector<16x32xf32>
    %197 = tpu.matmul %196, %184, %cst_103 {dimension_numbers = #tpu.dot_dimension_numbers<[1], [0], [0], [1], [0, 0, 1, 1], [], []>} : vector<16x64xf32>, vector<64x32xf32>, vector<16x32xf32> -> vector<16x32xf32>
    %c94 = arith.constant 94 : index
    %c0_104 = arith.constant 0 : index
    %198 = vector.load %arg3[%c94, %c0_104] : memref<128x128xf32, #tpu.memory_space<vmem>>, vector<1x32xf32>
    %199 = vector.broadcast %198 : vector<1x32xf32> to vector<16x32xf32>
    %200 = arith.addf %197, %199 : vector<16x32xf32>
    %201 = arith.addf %180, %200 : vector<16x32xf32>
    %c97 = arith.constant 97 : index
    %c0_105 = arith.constant 0 : index
    %202 = vector.load %arg3[%c97, %c0_105] : memref<128x128xf32, #tpu.memory_space<vmem>>, vector<1x32xf32>
    %c98 = arith.constant 98 : index
    %c0_106 = arith.constant 0 : index
    %203 = vector.load %arg3[%c98, %c0_106] : memref<128x128xf32, #tpu.memory_space<vmem>>, vector<1x32xf32>
    %cst_107 = arith.constant dense<0.000000e+00> : vector<32xf32>
    %204 = vector.multi_reduction <add>, %201, %cst_107 [0] : vector<16x32xf32> to vector<32xf32>
    %205 = vector.shape_cast %204 : vector<32xf32> to vector<1x32xf32>
    %cst_108 = arith.constant 1.600000e+01 : f32
    %206 = vector.broadcast %cst_108 : f32 to vector<1x32xf32>
    %207 = arith.divf %205, %206 : vector<1x32xf32>
    %208 = vector.broadcast %207 : vector<1x32xf32> to vector<16x32xf32>
    %209 = arith.subf %201, %208 : vector<16x32xf32>
    %210 = arith.mulf %209, %209 : vector<16x32xf32>
    %cst_109 = arith.constant dense<0.000000e+00> : vector<32xf32>
    %211 = vector.multi_reduction <add>, %210, %cst_109 [0] : vector<16x32xf32> to vector<32xf32>
    %212 = vector.shape_cast %211 : vector<32xf32> to vector<1x32xf32>
    %cst_110 = arith.constant 1.600000e+01 : f32
    %213 = vector.broadcast %cst_110 : f32 to vector<1x32xf32>
    %214 = arith.divf %212, %213 : vector<1x32xf32>
    %cst_111 = arith.constant 9.99999974E-6 : f32
    %215 = vector.broadcast %cst_111 : f32 to vector<1x32xf32>
    %216 = arith.addf %214, %215 : vector<1x32xf32>
    %217 = math.rsqrt %216 : vector<1x32xf32>
    %218 = vector.broadcast %217 : vector<1x32xf32> to vector<16x32xf32>
    %219 = arith.mulf %209, %218 : vector<16x32xf32>
    %220 = vector.broadcast %202 : vector<1x32xf32> to vector<16x32xf32>
    %221 = arith.mulf %219, %220 : vector<16x32xf32>
    %222 = vector.broadcast %203 : vector<1x32xf32> to vector<16x32xf32>
    %223 = arith.addf %221, %222 : vector<16x32xf32>
    %c1 = arith.constant 1 : index
    %c0_112 = arith.constant 0 : index
    %c0_113 = arith.constant 0 : index
    %224 = vector.load %arg2[%c1, %c0_112, %c0_113] : memref<2x224x64xf32, #tpu.memory_space<vmem>>, vector<1x8x32xf32>
    %225 = vector.shape_cast %224 : vector<1x8x32xf32> to vector<8x32xf32>
    %c1_114 = arith.constant 1 : index
    %c32_115 = arith.constant 32 : index
    %c0_116 = arith.constant 0 : index
    %226 = vector.load %arg2[%c1_114, %c32_115, %c0_116] : memref<2x224x64xf32, #tpu.memory_space<vmem>>, vector<1x8x32xf32>
    %227 = vector.shape_cast %226 : vector<1x8x32xf32> to vector<8x32xf32>
    %c1_117 = arith.constant 1 : index
    %c64_118 = arith.constant 64 : index
    %c0_119 = arith.constant 0 : index
    %228 = vector.load %arg2[%c1_117, %c64_118, %c0_119] : memref<2x224x64xf32, #tpu.memory_space<vmem>>, vector<1x8x32xf32>
    %229 = vector.shape_cast %228 : vector<1x8x32xf32> to vector<8x32xf32>
    %c104_120 = arith.constant 104 : index
    %c0_121 = arith.constant 0 : index
    %230 = vector.load %arg3[%c104_120, %c0_121] : memref<128x128xf32, #tpu.memory_space<vmem>>, vector<1x8xf32>
    %c108 = arith.constant 108 : index
    %c0_122 = arith.constant 0 : index
    %231 = vector.load %arg3[%c108, %c0_122] : memref<128x128xf32, #tpu.memory_space<vmem>>, vector<1x8xf32>
    %c112_123 = arith.constant 112 : index
    %c0_124 = arith.constant 0 : index
    %232 = vector.load %arg3[%c112_123, %c0_124] : memref<128x128xf32, #tpu.memory_space<vmem>>, vector<1x8xf32>
    %cst_125 = arith.constant dense<0.000000e+00> : vector<16x8xf32>
    %233 = tpu.matmul %223, %225, %cst_125 {dimension_numbers = #tpu.dot_dimension_numbers<[1], [1], [0], [0], [0, 0, 1, 0], [], []>} : vector<16x32xf32>, vector<8x32xf32>, vector<16x8xf32> -> vector<16x8xf32>
    %234 = vector.broadcast %230 : vector<1x8xf32> to vector<16x8xf32>
    %235 = arith.addf %233, %234 : vector<16x8xf32>
    %236 = vector.shape_cast %235 : vector<16x8xf32> to vector<2x8x8xf32>
    %cst_126 = arith.constant dense<0.000000e+00> : vector<16x8xf32>
    %237 = tpu.matmul %223, %227, %cst_126 {dimension_numbers = #tpu.dot_dimension_numbers<[1], [1], [0], [0], [0, 0, 1, 0], [], []>} : vector<16x32xf32>, vector<8x32xf32>, vector<16x8xf32> -> vector<16x8xf32>
    %238 = vector.broadcast %231 : vector<1x8xf32> to vector<16x8xf32>
    %239 = arith.addf %237, %238 : vector<16x8xf32>
    %240 = vector.shape_cast %239 : vector<16x8xf32> to vector<2x8x8xf32>
    %cst_127 = arith.constant dense<0.000000e+00> : vector<16x8xf32>
    %241 = tpu.matmul %223, %229, %cst_127 {dimension_numbers = #tpu.dot_dimension_numbers<[1], [1], [0], [0], [0, 0, 1, 0], [], []>} : vector<16x32xf32>, vector<8x32xf32>, vector<16x8xf32> -> vector<16x8xf32>
    %242 = vector.broadcast %232 : vector<1x8xf32> to vector<16x8xf32>
    %243 = arith.addf %241, %242 : vector<16x8xf32>
    %244 = vector.shape_cast %243 : vector<16x8xf32> to vector<2x8x8xf32>
    "tpu.trace_start"() <{level = 10 : i32, message = "bqd,bkd->bqk"}> : () -> ()
    %cst_128 = arith.constant dense<0.000000e+00> : vector<2x8x8xf32>
    %245 = tpu.matmul %236, %240, %cst_128 {dimension_numbers = #tpu.dot_dimension_numbers<[2], [2], [1], [1], [0, 0, 0, 1, 1, 1], [0], [0]>} : vector<2x8x8xf32>, vector<2x8x8xf32>, vector<2x8x8xf32> -> vector<2x8x8xf32>
    "tpu.trace_stop"() : () -> ()
    %246 = arith.addf %245, %3 : vector<2x8x8xf32>
    %cst_129 = arith.constant dense<0xFF800000> : vector<2x8xf32>
    %247 = vector.multi_reduction <maximumf>, %246, %cst_129 [2] : vector<2x8x8xf32> to vector<2x8xf32>
    %248 = vector.shape_cast %247 : vector<2x8xf32> to vector<2x8x1xf32>
    %249 = vector.broadcast %248 : vector<2x8x1xf32> to vector<2x8x8xf32>
    %250 = arith.subf %246, %249 : vector<2x8x8xf32>
    %251 = math.exp %250 : vector<2x8x8xf32>
    %cst_130 = arith.constant dense<0.000000e+00> : vector<2x8xf32>
    %252 = vector.multi_reduction <add>, %251, %cst_130 [2] : vector<2x8x8xf32> to vector<2x8xf32>
    %253 = vector.shape_cast %252 : vector<2x8xf32> to vector<2x8x1xf32>
    %254 = vector.broadcast %253 : vector<2x8x1xf32> to vector<2x8x8xf32>
    %255 = arith.divf %251, %254 : vector<2x8x8xf32>
    "tpu.trace_start"() <{level = 10 : i32, message = "bqk,bkd->bqd"}> : () -> ()
    %cst_131 = arith.constant dense<0.000000e+00> : vector<2x8x8xf32>
    %256 = tpu.matmul %255, %244, %cst_131 {dimension_numbers = #tpu.dot_dimension_numbers<[2], [1], [1], [2], [0, 0, 0, 1, 1, 2], [0], [0]>} : vector<2x8x8xf32>, vector<2x8x8xf32>, vector<2x8x8xf32> -> vector<2x8x8xf32>
    "tpu.trace_stop"() : () -> ()
    %257 = vector.shape_cast %256 : vector<2x8x8xf32> to vector<16x8xf32>
    %c1_132 = arith.constant 1 : index
    %c96_133 = arith.constant 96 : index
    %c0_134 = arith.constant 0 : index
    %258 = vector.load %arg2[%c1_132, %c96_133, %c0_134] : memref<2x224x64xf32, #tpu.memory_space<vmem>>, vector<1x8x32xf32>
    %259 = vector.shape_cast %258 : vector<1x8x32xf32> to vector<8x32xf32>
    %cst_135 = arith.constant dense<0.000000e+00> : vector<16x32xf32>
    %260 = tpu.matmul %257, %259, %cst_135 {dimension_numbers = #tpu.dot_dimension_numbers<[1], [0], [0], [1], [0, 0, 1, 1], [], []>} : vector<16x8xf32>, vector<8x32xf32>, vector<16x32xf32> -> vector<16x32xf32>
    %c1_136 = arith.constant 1 : index
    %c8_137 = arith.constant 8 : index
    %c0_138 = arith.constant 0 : index
    %261 = vector.load %arg2[%c1_136, %c8_137, %c0_138] : memref<2x224x64xf32, #tpu.memory_space<vmem>>, vector<1x8x32xf32>
    %262 = vector.shape_cast %261 : vector<1x8x32xf32> to vector<8x32xf32>
    %c1_139 = arith.constant 1 : index
    %c40_140 = arith.constant 40 : index
    %c0_141 = arith.constant 0 : index
    %263 = vector.load %arg2[%c1_139, %c40_140, %c0_141] : memref<2x224x64xf32, #tpu.memory_space<vmem>>, vector<1x8x32xf32>
    %264 = vector.shape_cast %263 : vector<1x8x32xf32> to vector<8x32xf32>
    %c1_142 = arith.constant 1 : index
    %c72_143 = arith.constant 72 : index
    %c0_144 = arith.constant 0 : index
    %265 = vector.load %arg2[%c1_142, %c72_143, %c0_144] : memref<2x224x64xf32, #tpu.memory_space<vmem>>, vector<1x8x32xf32>
    %266 = vector.shape_cast %265 : vector<1x8x32xf32> to vector<8x32xf32>
    %c105 = arith.constant 105 : index
    %c0_145 = arith.constant 0 : index
    %267 = vector.load %arg3[%c105, %c0_145] : memref<128x128xf32, #tpu.memory_space<vmem>>, vector<1x8xf32>
    %c109 = arith.constant 109 : index
    %c0_146 = arith.constant 0 : index
    %268 = vector.load %arg3[%c109, %c0_146] : memref<128x128xf32, #tpu.memory_space<vmem>>, vector<1x8xf32>
    %c113 = arith.constant 113 : index
    %c0_147 = arith.constant 0 : index
    %269 = vector.load %arg3[%c113, %c0_147] : memref<128x128xf32, #tpu.memory_space<vmem>>, vector<1x8xf32>
    %cst_148 = arith.constant dense<0.000000e+00> : vector<16x8xf32>
    %270 = tpu.matmul %223, %262, %cst_148 {dimension_numbers = #tpu.dot_dimension_numbers<[1], [1], [0], [0], [0, 0, 1, 0], [], []>} : vector<16x32xf32>, vector<8x32xf32>, vector<16x8xf32> -> vector<16x8xf32>
    %271 = vector.broadcast %267 : vector<1x8xf32> to vector<16x8xf32>
    %272 = arith.addf %270, %271 : vector<16x8xf32>
    %273 = vector.shape_cast %272 : vector<16x8xf32> to vector<2x8x8xf32>
    %cst_149 = arith.constant dense<0.000000e+00> : vector<16x8xf32>
    %274 = tpu.matmul %223, %264, %cst_149 {dimension_numbers = #tpu.dot_dimension_numbers<[1], [1], [0], [0], [0, 0, 1, 0], [], []>} : vector<16x32xf32>, vector<8x32xf32>, vector<16x8xf32> -> vector<16x8xf32>
    %275 = vector.broadcast %268 : vector<1x8xf32> to vector<16x8xf32>
    %276 = arith.addf %274, %275 : vector<16x8xf32>
    %277 = vector.shape_cast %276 : vector<16x8xf32> to vector<2x8x8xf32>
    %cst_150 = arith.constant dense<0.000000e+00> : vector<16x8xf32>
    %278 = tpu.matmul %223, %266, %cst_150 {dimension_numbers = #tpu.dot_dimension_numbers<[1], [1], [0], [0], [0, 0, 1, 0], [], []>} : vector<16x32xf32>, vector<8x32xf32>, vector<16x8xf32> -> vector<16x8xf32>
    %279 = vector.broadcast %269 : vector<1x8xf32> to vector<16x8xf32>
    %280 = arith.addf %278, %279 : vector<16x8xf32>
    %281 = vector.shape_cast %280 : vector<16x8xf32> to vector<2x8x8xf32>
    "tpu.trace_start"() <{level = 10 : i32, message = "bqd,bkd->bqk"}> : () -> ()
    %cst_151 = arith.constant dense<0.000000e+00> : vector<2x8x8xf32>
    %282 = tpu.matmul %273, %277, %cst_151 {dimension_numbers = #tpu.dot_dimension_numbers<[2], [2], [1], [1], [0, 0, 0, 1, 1, 1], [0], [0]>} : vector<2x8x8xf32>, vector<2x8x8xf32>, vector<2x8x8xf32> -> vector<2x8x8xf32>
    "tpu.trace_stop"() : () -> ()
    %283 = arith.addf %282, %3 : vector<2x8x8xf32>
    %cst_152 = arith.constant dense<0xFF800000> : vector<2x8xf32>
    %284 = vector.multi_reduction <maximumf>, %283, %cst_152 [2] : vector<2x8x8xf32> to vector<2x8xf32>
    %285 = vector.shape_cast %284 : vector<2x8xf32> to vector<2x8x1xf32>
    %286 = vector.broadcast %285 : vector<2x8x1xf32> to vector<2x8x8xf32>
    %287 = arith.subf %283, %286 : vector<2x8x8xf32>
    %288 = math.exp %287 : vector<2x8x8xf32>
    %cst_153 = arith.constant dense<0.000000e+00> : vector<2x8xf32>
    %289 = vector.multi_reduction <add>, %288, %cst_153 [2] : vector<2x8x8xf32> to vector<2x8xf32>
    %290 = vector.shape_cast %289 : vector<2x8xf32> to vector<2x8x1xf32>
    %291 = vector.broadcast %290 : vector<2x8x1xf32> to vector<2x8x8xf32>
    %292 = arith.divf %288, %291 : vector<2x8x8xf32>
    "tpu.trace_start"() <{level = 10 : i32, message = "bqk,bkd->bqd"}> : () -> ()
    %cst_154 = arith.constant dense<0.000000e+00> : vector<2x8x8xf32>
    %293 = tpu.matmul %292, %281, %cst_154 {dimension_numbers = #tpu.dot_dimension_numbers<[2], [1], [1], [2], [0, 0, 0, 1, 1, 2], [0], [0]>} : vector<2x8x8xf32>, vector<2x8x8xf32>, vector<2x8x8xf32> -> vector<2x8x8xf32>
    "tpu.trace_stop"() : () -> ()
    %294 = vector.shape_cast %293 : vector<2x8x8xf32> to vector<16x8xf32>
    %c1_155 = arith.constant 1 : index
    %c104_156 = arith.constant 104 : index
    %c0_157 = arith.constant 0 : index
    %295 = vector.load %arg2[%c1_155, %c104_156, %c0_157] : memref<2x224x64xf32, #tpu.memory_space<vmem>>, vector<1x8x32xf32>
    %296 = vector.shape_cast %295 : vector<1x8x32xf32> to vector<8x32xf32>
    %cst_158 = arith.constant dense<0.000000e+00> : vector<16x32xf32>
    %297 = tpu.matmul %294, %296, %cst_158 {dimension_numbers = #tpu.dot_dimension_numbers<[1], [0], [0], [1], [0, 0, 1, 1], [], []>} : vector<16x8xf32>, vector<8x32xf32>, vector<16x32xf32> -> vector<16x32xf32>
    %298 = arith.addf %260, %297 : vector<16x32xf32>
    %c1_159 = arith.constant 1 : index
    %c16_160 = arith.constant 16 : index
    %c0_161 = arith.constant 0 : index
    %299 = vector.load %arg2[%c1_159, %c16_160, %c0_161] : memref<2x224x64xf32, #tpu.memory_space<vmem>>, vector<1x8x32xf32>
    %300 = vector.shape_cast %299 : vector<1x8x32xf32> to vector<8x32xf32>
    %c1_162 = arith.constant 1 : index
    %c48_163 = arith.constant 48 : index
    %c0_164 = arith.constant 0 : index
    %301 = vector.load %arg2[%c1_162, %c48_163, %c0_164] : memref<2x224x64xf32, #tpu.memory_space<vmem>>, vector<1x8x32xf32>
    %302 = vector.shape_cast %301 : vector<1x8x32xf32> to vector<8x32xf32>
    %c1_165 = arith.constant 1 : index
    %c80_166 = arith.constant 80 : index
    %c0_167 = arith.constant 0 : index
    %303 = vector.load %arg2[%c1_165, %c80_166, %c0_167] : memref<2x224x64xf32, #tpu.memory_space<vmem>>, vector<1x8x32xf32>
    %304 = vector.shape_cast %303 : vector<1x8x32xf32> to vector<8x32xf32>
    %c106 = arith.constant 106 : index
    %c0_168 = arith.constant 0 : index
    %305 = vector.load %arg3[%c106, %c0_168] : memref<128x128xf32, #tpu.memory_space<vmem>>, vector<1x8xf32>
    %c110 = arith.constant 110 : index
    %c0_169 = arith.constant 0 : index
    %306 = vector.load %arg3[%c110, %c0_169] : memref<128x128xf32, #tpu.memory_space<vmem>>, vector<1x8xf32>
    %c114 = arith.constant 114 : index
    %c0_170 = arith.constant 0 : index
    %307 = vector.load %arg3[%c114, %c0_170] : memref<128x128xf32, #tpu.memory_space<vmem>>, vector<1x8xf32>
    %cst_171 = arith.constant dense<0.000000e+00> : vector<16x8xf32>
    %308 = tpu.matmul %223, %300, %cst_171 {dimension_numbers = #tpu.dot_dimension_numbers<[1], [1], [0], [0], [0, 0, 1, 0], [], []>} : vector<16x32xf32>, vector<8x32xf32>, vector<16x8xf32> -> vector<16x8xf32>
    %309 = vector.broadcast %305 : vector<1x8xf32> to vector<16x8xf32>
    %310 = arith.addf %308, %309 : vector<16x8xf32>
    %311 = vector.shape_cast %310 : vector<16x8xf32> to vector<2x8x8xf32>
    %cst_172 = arith.constant dense<0.000000e+00> : vector<16x8xf32>
    %312 = tpu.matmul %223, %302, %cst_172 {dimension_numbers = #tpu.dot_dimension_numbers<[1], [1], [0], [0], [0, 0, 1, 0], [], []>} : vector<16x32xf32>, vector<8x32xf32>, vector<16x8xf32> -> vector<16x8xf32>
    %313 = vector.broadcast %306 : vector<1x8xf32> to vector<16x8xf32>
    %314 = arith.addf %312, %313 : vector<16x8xf32>
    %315 = vector.shape_cast %314 : vector<16x8xf32> to vector<2x8x8xf32>
    %cst_173 = arith.constant dense<0.000000e+00> : vector<16x8xf32>
    %316 = tpu.matmul %223, %304, %cst_173 {dimension_numbers = #tpu.dot_dimension_numbers<[1], [1], [0], [0], [0, 0, 1, 0], [], []>} : vector<16x32xf32>, vector<8x32xf32>, vector<16x8xf32> -> vector<16x8xf32>
    %317 = vector.broadcast %307 : vector<1x8xf32> to vector<16x8xf32>
    %318 = arith.addf %316, %317 : vector<16x8xf32>
    %319 = vector.shape_cast %318 : vector<16x8xf32> to vector<2x8x8xf32>
    "tpu.trace_start"() <{level = 10 : i32, message = "bqd,bkd->bqk"}> : () -> ()
    %cst_174 = arith.constant dense<0.000000e+00> : vector<2x8x8xf32>
    %320 = tpu.matmul %311, %315, %cst_174 {dimension_numbers = #tpu.dot_dimension_numbers<[2], [2], [1], [1], [0, 0, 0, 1, 1, 1], [0], [0]>} : vector<2x8x8xf32>, vector<2x8x8xf32>, vector<2x8x8xf32> -> vector<2x8x8xf32>
    "tpu.trace_stop"() : () -> ()
    %321 = arith.addf %320, %3 : vector<2x8x8xf32>
    %cst_175 = arith.constant dense<0xFF800000> : vector<2x8xf32>
    %322 = vector.multi_reduction <maximumf>, %321, %cst_175 [2] : vector<2x8x8xf32> to vector<2x8xf32>
    %323 = vector.shape_cast %322 : vector<2x8xf32> to vector<2x8x1xf32>
    %324 = vector.broadcast %323 : vector<2x8x1xf32> to vector<2x8x8xf32>
    %325 = arith.subf %321, %324 : vector<2x8x8xf32>
    %326 = math.exp %325 : vector<2x8x8xf32>
    %cst_176 = arith.constant dense<0.000000e+00> : vector<2x8xf32>
    %327 = vector.multi_reduction <add>, %326, %cst_176 [2] : vector<2x8x8xf32> to vector<2x8xf32>
    %328 = vector.shape_cast %327 : vector<2x8xf32> to vector<2x8x1xf32>
    %329 = vector.broadcast %328 : vector<2x8x1xf32> to vector<2x8x8xf32>
    %330 = arith.divf %326, %329 : vector<2x8x8xf32>
    "tpu.trace_start"() <{level = 10 : i32, message = "bqk,bkd->bqd"}> : () -> ()
    %cst_177 = arith.constant dense<0.000000e+00> : vector<2x8x8xf32>
    %331 = tpu.matmul %330, %319, %cst_177 {dimension_numbers = #tpu.dot_dimension_numbers<[2], [1], [1], [2], [0, 0, 0, 1, 1, 2], [0], [0]>} : vector<2x8x8xf32>, vector<2x8x8xf32>, vector<2x8x8xf32> -> vector<2x8x8xf32>
    "tpu.trace_stop"() : () -> ()
    %332 = vector.shape_cast %331 : vector<2x8x8xf32> to vector<16x8xf32>
    %c1_178 = arith.constant 1 : index
    %c112_179 = arith.constant 112 : index
    %c0_180 = arith.constant 0 : index
    %333 = vector.load %arg2[%c1_178, %c112_179, %c0_180] : memref<2x224x64xf32, #tpu.memory_space<vmem>>, vector<1x8x32xf32>
    %334 = vector.shape_cast %333 : vector<1x8x32xf32> to vector<8x32xf32>
    %cst_181 = arith.constant dense<0.000000e+00> : vector<16x32xf32>
    %335 = tpu.matmul %332, %334, %cst_181 {dimension_numbers = #tpu.dot_dimension_numbers<[1], [0], [0], [1], [0, 0, 1, 1], [], []>} : vector<16x8xf32>, vector<8x32xf32>, vector<16x32xf32> -> vector<16x32xf32>
    %336 = arith.addf %298, %335 : vector<16x32xf32>
    %c1_182 = arith.constant 1 : index
    %c24_183 = arith.constant 24 : index
    %c0_184 = arith.constant 0 : index
    %337 = vector.load %arg2[%c1_182, %c24_183, %c0_184] : memref<2x224x64xf32, #tpu.memory_space<vmem>>, vector<1x8x32xf32>
    %338 = vector.shape_cast %337 : vector<1x8x32xf32> to vector<8x32xf32>
    %c1_185 = arith.constant 1 : index
    %c56_186 = arith.constant 56 : index
    %c0_187 = arith.constant 0 : index
    %339 = vector.load %arg2[%c1_185, %c56_186, %c0_187] : memref<2x224x64xf32, #tpu.memory_space<vmem>>, vector<1x8x32xf32>
    %340 = vector.shape_cast %339 : vector<1x8x32xf32> to vector<8x32xf32>
    %c1_188 = arith.constant 1 : index
    %c88_189 = arith.constant 88 : index
    %c0_190 = arith.constant 0 : index
    %341 = vector.load %arg2[%c1_188, %c88_189, %c0_190] : memref<2x224x64xf32, #tpu.memory_space<vmem>>, vector<1x8x32xf32>
    %342 = vector.shape_cast %341 : vector<1x8x32xf32> to vector<8x32xf32>
    %c107 = arith.constant 107 : index
    %c0_191 = arith.constant 0 : index
    %343 = vector.load %arg3[%c107, %c0_191] : memref<128x128xf32, #tpu.memory_space<vmem>>, vector<1x8xf32>
    %c111 = arith.constant 111 : index
    %c0_192 = arith.constant 0 : index
    %344 = vector.load %arg3[%c111, %c0_192] : memref<128x128xf32, #tpu.memory_space<vmem>>, vector<1x8xf32>
    %c115 = arith.constant 115 : index
    %c0_193 = arith.constant 0 : index
    %345 = vector.load %arg3[%c115, %c0_193] : memref<128x128xf32, #tpu.memory_space<vmem>>, vector<1x8xf32>
    %cst_194 = arith.constant dense<0.000000e+00> : vector<16x8xf32>
    %346 = tpu.matmul %223, %338, %cst_194 {dimension_numbers = #tpu.dot_dimension_numbers<[1], [1], [0], [0], [0, 0, 1, 0], [], []>} : vector<16x32xf32>, vector<8x32xf32>, vector<16x8xf32> -> vector<16x8xf32>
    %347 = vector.broadcast %343 : vector<1x8xf32> to vector<16x8xf32>
    %348 = arith.addf %346, %347 : vector<16x8xf32>
    %349 = vector.shape_cast %348 : vector<16x8xf32> to vector<2x8x8xf32>
    %cst_195 = arith.constant dense<0.000000e+00> : vector<16x8xf32>
    %350 = tpu.matmul %223, %340, %cst_195 {dimension_numbers = #tpu.dot_dimension_numbers<[1], [1], [0], [0], [0, 0, 1, 0], [], []>} : vector<16x32xf32>, vector<8x32xf32>, vector<16x8xf32> -> vector<16x8xf32>
    %351 = vector.broadcast %344 : vector<1x8xf32> to vector<16x8xf32>
    %352 = arith.addf %350, %351 : vector<16x8xf32>
    %353 = vector.shape_cast %352 : vector<16x8xf32> to vector<2x8x8xf32>
    %cst_196 = arith.constant dense<0.000000e+00> : vector<16x8xf32>
    %354 = tpu.matmul %223, %342, %cst_196 {dimension_numbers = #tpu.dot_dimension_numbers<[1], [1], [0], [0], [0, 0, 1, 0], [], []>} : vector<16x32xf32>, vector<8x32xf32>, vector<16x8xf32> -> vector<16x8xf32>
    %355 = vector.broadcast %345 : vector<1x8xf32> to vector<16x8xf32>
    %356 = arith.addf %354, %355 : vector<16x8xf32>
    %357 = vector.shape_cast %356 : vector<16x8xf32> to vector<2x8x8xf32>
    "tpu.trace_start"() <{level = 10 : i32, message = "bqd,bkd->bqk"}> : () -> ()
    %cst_197 = arith.constant dense<0.000000e+00> : vector<2x8x8xf32>
    %358 = tpu.matmul %349, %353, %cst_197 {dimension_numbers = #tpu.dot_dimension_numbers<[2], [2], [1], [1], [0, 0, 0, 1, 1, 1], [0], [0]>} : vector<2x8x8xf32>, vector<2x8x8xf32>, vector<2x8x8xf32> -> vector<2x8x8xf32>
    "tpu.trace_stop"() : () -> ()
    %359 = arith.addf %358, %3 : vector<2x8x8xf32>
    %cst_198 = arith.constant dense<0xFF800000> : vector<2x8xf32>
    %360 = vector.multi_reduction <maximumf>, %359, %cst_198 [2] : vector<2x8x8xf32> to vector<2x8xf32>
    %361 = vector.shape_cast %360 : vector<2x8xf32> to vector<2x8x1xf32>
    %362 = vector.broadcast %361 : vector<2x8x1xf32> to vector<2x8x8xf32>
    %363 = arith.subf %359, %362 : vector<2x8x8xf32>
    %364 = math.exp %363 : vector<2x8x8xf32>
    %cst_199 = arith.constant dense<0.000000e+00> : vector<2x8xf32>
    %365 = vector.multi_reduction <add>, %364, %cst_199 [2] : vector<2x8x8xf32> to vector<2x8xf32>
    %366 = vector.shape_cast %365 : vector<2x8xf32> to vector<2x8x1xf32>
    %367 = vector.broadcast %366 : vector<2x8x1xf32> to vector<2x8x8xf32>
    %368 = arith.divf %364, %367 : vector<2x8x8xf32>
    "tpu.trace_start"() <{level = 10 : i32, message = "bqk,bkd->bqd"}> : () -> ()
    %cst_200 = arith.constant dense<0.000000e+00> : vector<2x8x8xf32>
    %369 = tpu.matmul %368, %357, %cst_200 {dimension_numbers = #tpu.dot_dimension_numbers<[2], [1], [1], [2], [0, 0, 0, 1, 1, 2], [0], [0]>} : vector<2x8x8xf32>, vector<2x8x8xf32>, vector<2x8x8xf32> -> vector<2x8x8xf32>
    "tpu.trace_stop"() : () -> ()
    %370 = vector.shape_cast %369 : vector<2x8x8xf32> to vector<16x8xf32>
    %c1_201 = arith.constant 1 : index
    %c120_202 = arith.constant 120 : index
    %c0_203 = arith.constant 0 : index
    %371 = vector.load %arg2[%c1_201, %c120_202, %c0_203] : memref<2x224x64xf32, #tpu.memory_space<vmem>>, vector<1x8x32xf32>
    %372 = vector.shape_cast %371 : vector<1x8x32xf32> to vector<8x32xf32>
    %cst_204 = arith.constant dense<0.000000e+00> : vector<16x32xf32>
    %373 = tpu.matmul %370, %372, %cst_204 {dimension_numbers = #tpu.dot_dimension_numbers<[1], [0], [0], [1], [0, 0, 1, 1], [], []>} : vector<16x8xf32>, vector<8x32xf32>, vector<16x32xf32> -> vector<16x32xf32>
    %374 = arith.addf %336, %373 : vector<16x32xf32>
    %c116 = arith.constant 116 : index
    %c0_205 = arith.constant 0 : index
    %375 = vector.load %arg3[%c116, %c0_205] : memref<128x128xf32, #tpu.memory_space<vmem>>, vector<1x32xf32>
    %376 = vector.broadcast %375 : vector<1x32xf32> to vector<16x32xf32>
    %377 = arith.addf %374, %376 : vector<16x32xf32>
    %378 = arith.addf %223, %377 : vector<16x32xf32>
    %c119 = arith.constant 119 : index
    %c0_206 = arith.constant 0 : index
    %379 = vector.load %arg3[%c119, %c0_206] : memref<128x128xf32, #tpu.memory_space<vmem>>, vector<1x32xf32>
    %c120_207 = arith.constant 120 : index
    %c0_208 = arith.constant 0 : index
    %380 = vector.load %arg3[%c120_207, %c0_208] : memref<128x128xf32, #tpu.memory_space<vmem>>, vector<1x32xf32>
    %cst_209 = arith.constant dense<0.000000e+00> : vector<32xf32>
    %381 = vector.multi_reduction <add>, %378, %cst_209 [0] : vector<16x32xf32> to vector<32xf32>
    %382 = vector.shape_cast %381 : vector<32xf32> to vector<1x32xf32>
    %cst_210 = arith.constant 1.600000e+01 : f32
    %383 = vector.broadcast %cst_210 : f32 to vector<1x32xf32>
    %384 = arith.divf %382, %383 : vector<1x32xf32>
    %385 = vector.broadcast %384 : vector<1x32xf32> to vector<16x32xf32>
    %386 = arith.subf %378, %385 : vector<16x32xf32>
    %387 = arith.mulf %386, %386 : vector<16x32xf32>
    %cst_211 = arith.constant dense<0.000000e+00> : vector<32xf32>
    %388 = vector.multi_reduction <add>, %387, %cst_211 [0] : vector<16x32xf32> to vector<32xf32>
    %389 = vector.shape_cast %388 : vector<32xf32> to vector<1x32xf32>
    %cst_212 = arith.constant 1.600000e+01 : f32
    %390 = vector.broadcast %cst_212 : f32 to vector<1x32xf32>
    %391 = arith.divf %389, %390 : vector<1x32xf32>
    %cst_213 = arith.constant 9.99999974E-6 : f32
    %392 = vector.broadcast %cst_213 : f32 to vector<1x32xf32>
    %393 = arith.addf %391, %392 : vector<1x32xf32>
    %394 = math.rsqrt %393 : vector<1x32xf32>
    %395 = vector.broadcast %394 : vector<1x32xf32> to vector<16x32xf32>
    %396 = arith.mulf %386, %395 : vector<16x32xf32>
    %397 = vector.broadcast %379 : vector<1x32xf32> to vector<16x32xf32>
    %398 = arith.mulf %396, %397 : vector<16x32xf32>
    %399 = vector.broadcast %380 : vector<1x32xf32> to vector<16x32xf32>
    %400 = arith.addf %398, %399 : vector<16x32xf32>
    %c1_214 = arith.constant 1 : index
    %c128_215 = arith.constant 128 : index
    %c0_216 = arith.constant 0 : index
    %401 = vector.load %arg2[%c1_214, %c128_215, %c0_216] : memref<2x224x64xf32, #tpu.memory_space<vmem>>, vector<1x32x64xf32>
    %402 = vector.shape_cast %401 : vector<1x32x64xf32> to vector<32x64xf32>
    %c1_217 = arith.constant 1 : index
    %c160_218 = arith.constant 160 : index
    %c0_219 = arith.constant 0 : index
    %403 = vector.load %arg2[%c1_217, %c160_218, %c0_219] : memref<2x224x64xf32, #tpu.memory_space<vmem>>, vector<1x64x32xf32>
    %404 = vector.shape_cast %403 : vector<1x64x32xf32> to vector<64x32xf32>
    %cst_220 = arith.constant dense<0.000000e+00> : vector<16x64xf32>
    %405 = tpu.matmul %400, %402, %cst_220 {dimension_numbers = #tpu.dot_dimension_numbers<[1], [0], [0], [1], [0, 0, 1, 1], [], []>} : vector<16x32xf32>, vector<32x64xf32>, vector<16x64xf32> -> vector<16x64xf32>
    %c117 = arith.constant 117 : index
    %c0_221 = arith.constant 0 : index
    %406 = vector.load %arg3[%c117, %c0_221] : memref<128x128xf32, #tpu.memory_space<vmem>>, vector<1x64xf32>
    %407 = vector.broadcast %406 : vector<1x64xf32> to vector<16x64xf32>
    %408 = arith.addf %405, %407 : vector<16x64xf32>
    %cst_222 = arith.constant 5.000000e-01 : f32
    %409 = vector.broadcast %cst_222 : f32 to vector<16x64xf32>
    %410 = arith.mulf %409, %408 : vector<16x64xf32>
    %cst_223 = arith.constant 0.707106769 : f32
    %411 = vector.broadcast %cst_223 : f32 to vector<16x64xf32>
    %412 = arith.mulf %408, %411 : vector<16x64xf32>
    %413 = math.erf %412 : vector<16x64xf32>
    %cst_224 = arith.constant 1.000000e+00 : f32
    %414 = vector.broadcast %cst_224 : f32 to vector<16x64xf32>
    %415 = arith.addf %414, %413 : vector<16x64xf32>
    %416 = arith.mulf %410, %415 : vector<16x64xf32>
    %cst_225 = arith.constant dense<0.000000e+00> : vector<16x32xf32>
    %417 = tpu.matmul %416, %404, %cst_225 {dimension_numbers = #tpu.dot_dimension_numbers<[1], [0], [0], [1], [0, 0, 1, 1], [], []>} : vector<16x64xf32>, vector<64x32xf32>, vector<16x32xf32> -> vector<16x32xf32>
    %c118 = arith.constant 118 : index
    %c0_226 = arith.constant 0 : index
    %418 = vector.load %arg3[%c118, %c0_226] : memref<128x128xf32, #tpu.memory_space<vmem>>, vector<1x32xf32>
    %419 = vector.broadcast %418 : vector<1x32xf32> to vector<16x32xf32>
    %420 = arith.addf %417, %419 : vector<16x32xf32>
    %421 = arith.addf %400, %420 : vector<16x32xf32>
    %c121 = arith.constant 121 : index
    %c0_227 = arith.constant 0 : index
    %422 = vector.load %arg3[%c121, %c0_227] : memref<128x128xf32, #tpu.memory_space<vmem>>, vector<1x32xf32>
    %c122 = arith.constant 122 : index
    %c0_228 = arith.constant 0 : index
    %423 = vector.load %arg3[%c122, %c0_228] : memref<128x128xf32, #tpu.memory_space<vmem>>, vector<1x32xf32>
    %cst_229 = arith.constant dense<0.000000e+00> : vector<32xf32>
    %424 = vector.multi_reduction <add>, %421, %cst_229 [0] : vector<16x32xf32> to vector<32xf32>
    %425 = vector.shape_cast %424 : vector<32xf32> to vector<1x32xf32>
    %cst_230 = arith.constant 1.600000e+01 : f32
    %426 = vector.broadcast %cst_230 : f32 to vector<1x32xf32>
    %427 = arith.divf %425, %426 : vector<1x32xf32>
    %428 = vector.broadcast %427 : vector<1x32xf32> to vector<16x32xf32>
    %429 = arith.subf %421, %428 : vector<16x32xf32>
    %430 = arith.mulf %429, %429 : vector<16x32xf32>
    %cst_231 = arith.constant dense<0.000000e+00> : vector<32xf32>
    %431 = vector.multi_reduction <add>, %430, %cst_231 [0] : vector<16x32xf32> to vector<32xf32>
    %432 = vector.shape_cast %431 : vector<32xf32> to vector<1x32xf32>
    %cst_232 = arith.constant 1.600000e+01 : f32
    %433 = vector.broadcast %cst_232 : f32 to vector<1x32xf32>
    %434 = arith.divf %432, %433 : vector<1x32xf32>
    %cst_233 = arith.constant 9.99999974E-6 : f32
    %435 = vector.broadcast %cst_233 : f32 to vector<1x32xf32>
    %436 = arith.addf %434, %435 : vector<1x32xf32>
    %437 = math.rsqrt %436 : vector<1x32xf32>
    %438 = vector.broadcast %437 : vector<1x32xf32> to vector<16x32xf32>
    %439 = arith.mulf %429, %438 : vector<16x32xf32>
    %440 = vector.broadcast %422 : vector<1x32xf32> to vector<16x32xf32>
    %441 = arith.mulf %439, %440 : vector<16x32xf32>
    %442 = vector.broadcast %423 : vector<1x32xf32> to vector<16x32xf32>
    %443 = arith.addf %441, %442 : vector<16x32xf32>
    %cst_234 = arith.constant 5.000000e-01 : f32
    %444 = vector.broadcast %cst_234 : f32 to vector<16x32xf32>
    %445 = arith.mulf %444, %443 : vector<16x32xf32>
    %cst_235 = arith.constant 0.707106769 : f32
    %446 = vector.broadcast %cst_235 : f32 to vector<16x32xf32>
    %447 = arith.mulf %443, %446 : vector<16x32xf32>
    %448 = math.erf %447 : vector<16x32xf32>
    %cst_236 = arith.constant 1.000000e+00 : f32
    %449 = vector.broadcast %cst_236 : f32 to vector<16x32xf32>
    %450 = arith.addf %449, %448 : vector<16x32xf32>
    %451 = arith.mulf %445, %450 : vector<16x32xf32>
    %c40_237 = arith.constant 40 : index
    %c0_238 = arith.constant 0 : index
    %452 = vector.load %arg3[%c40_237, %c0_238] : memref<128x128xf32, #tpu.memory_space<vmem>>, vector<32x128xf32>
    %cst_239 = arith.constant dense<0.000000e+00> : vector<16x128xf32>
    %453 = tpu.matmul %451, %452, %cst_239 {dimension_numbers = #tpu.dot_dimension_numbers<[1], [0], [0], [1], [0, 0, 1, 1], [], []>} : vector<16x32xf32>, vector<32x128xf32>, vector<16x128xf32> -> vector<16x128xf32>
    %c72_240 = arith.constant 72 : index
    %c0_241 = arith.constant 0 : index
    %454 = vector.load %arg3[%c72_240, %c0_241] : memref<128x128xf32, #tpu.memory_space<vmem>>, vector<1x128xf32>
    %455 = vector.broadcast %454 : vector<1x128xf32> to vector<16x128xf32>
    %456 = arith.addf %453, %455 : vector<16x128xf32>
    %c0_242 = arith.constant 0 : index
    %c0_243 = arith.constant 0 : index
    %457 = vector.load %arg4[%c0_242, %c0_243] : memref<16x128xf32, #tpu.memory_space<vmem>>, vector<16x128xf32>
    tpu.vector_store %arg4[%c0_242, %c0_243], %456 {strides = array<i32>} : memref<16x128xf32, #tpu.memory_space<vmem>>, vector<16x128xf32>,
    return
  }
}

</mosaic_0001>

<bundles_post_ra>
// kernel: ts_transformer_encoder_fed_forward.1
= control target key start
LH: loop header
LB: loop body
LE: loop exit
PB: predicated region body
PF: predicated region fallthrough
CT: control target
= control target key end

     0   :  { %vm24_vm0 = vcmask 293888   ;;  %vm122_vm1 = vcmask 261120   ;;  %vm31_vm2 = vcmask 1043456   ;;  %v7042_v14 = vmov 0.0   ;;  %s7817_s3 = inlined_call_operand.vmem [shape: f32[128,128], index: 3, kind: input, shape index: {}]   ;;  %s7818_s0 = inlined_call_operand.vmem [shape: f32[16,36], index: 0, kind: input, shape index: {}]   ;;  %s7819_s2 = inlined_call_operand.vmem [shape: f32[2,224,64], index: 2, kind: input, shape index: {}]   ;;  %s7820_s1 = inlined_call_operand.vmem [shape: f32[2,8,8], index: 1, kind: input, shape index: {}]   ;;  %s7821_s4 = inlined_call_operand.vmem [shape: f32[16,128], index: 4, kind: output, shape index: {}]  }
   0x1   :  { %v17_v0 = vld [vmem:[%s7817_s3] sm:$0xff]  ;;  %v18_v1 = vld [vmem:[%s7817_s3 + $0x8] sm:$0xff]  ;;  %v19_v2 = vld [vmem:[%s7817_s3 + $0x10] sm:$0xff]  ;;  %vm7043_vm3 = vmmov 0   ;;  %vm371_vm4 = vcmask 64512   ;;  %vm2905_vm5 = vcmask 523264  }
   0x2   :  { %v6878_v3 = vpack.c.bf16 %v18_v1, %v17_v0  ;;  %v20_v4 = vld [vmem:[%s7817_s3 + $0x18] sm:$0xff]  ;;  %v22_v5 = vld [vmem:[%s7818_s0] sm:$0xff]  ;;  %v23_v9 = vld [vmem:[%s7818_s0 + $0x8] sm:$0xff] }
   0x3   :  { %v6882_v6 = vpack.c.bf16 %v20_v4, %v19_v2  ;;  %6484 = vmatprep.mubr.msk.f32.mxu0 %vm24_vm0, %v22_v5  ;;  %v113_v7 = vld [vmem:[%s7819_s2 + $0x20] sm:$0xff]  ;;  %v6060_v15 = vld [vmem:[%s7817_s3 + $0x54] ss:$0 sm:$0xff]  ;;  %v6056_v18 = vld [vmem:[%s7817_s3 + $0x50] ss:$0 sm:$0xff] }
   0x4   :  { %6879 = vmatprep.subr.bf16.mxu0 %v6878_v3  ;;  %6492 = vmatprep.subr.msk.mxu1 %vm122_vm1, %v113_v7  ;;  %v21_v8 = vld [vmem:[%s7817_s3 + $0x20] sm:$0xf]  ;;  %v6064_v23 = vld [vmem:[%s7817_s3 + $0x58] ss:$0 sm:$0xff]  ;;  %v7151_v30 = vld [vmem:[%s7820_s1 + $0x8] sm:$0xff] }
   0x5   :  { %6881 = vmatpush3.bf16.msra.mxu0 %v6878_v3  ;;  %6493 = vmatpush3.xpose.msk.msra.mxu1 %vm122_vm1, %v113_v7  ;;  %v112_v10 = vld [vmem:[%s7819_s2] sm:$0xff]  ;;  %v694_v50 = vld [vmem:[%s7819_s2 + $0x28] sm:$0xff]  ;;  %v6078_v61 = vld [vmem:[%s7817_s3 + $0x55] ss:$0 sm:$0xff] }
   0x6   :  { %6883 = vmatprep.subr.bf16.mxu0 %v6882_v6  ;;  %v114_v11 = vld [vmem:[%s7819_s2 + $0x40] sm:$0xff]  ;;  %v693_v51 = vld [vmem:[%s7819_s2 + $0x8] sm:$0xff]  ;;  %v6074_v4 = vld [vmem:[%s7817_s3 + $0x51] ss:$0 sm:$0xff] }
   0x7   :  { %6497 = vmatprep.subr.msk.mxu1 %vm122_vm1, %v114_v11  ;;  %v7156_v32 = vld [vmem:[%s7820_s1] sm:$0xff]  ;;  %v695_v58 = vld [vmem:[%s7819_s2 + $0x48] sm:$0xff] }
   0x9   :  { %6885 = vmatpush3.bf16.msra.mxu0 %v6882_v6 }
   0xa   :  { %6482 = vmatprep.subr.msk.mxu0 %vm31_vm2, %v21_v8 }
   0xd   :  { %6483 = vmatpush3.msk.msra.mxu0 %vm31_vm2, %v21_v8 }
   0xe   :  { %6485 = vmatmul.mubr.msk.f32.vlgmr.msra.gmra.mrb[0].mxu0 %vm24_vm0, %v23_v9  ;;  %6487 = vmatprep.subr.msk.mxu0 %vm122_vm1, %v112_v10  ;;  %v6082_v9 = vld [vmem:[%s7817_s3 + $0x59] ss:$0 sm:$0xff] }
  0x14   :  { %6488 = vmatpush3.xpose.msk.msra.mxu0 %vm122_vm1, %v112_v10 }
  0x15   :  { %6502 = vmatprep.subr.mxu0 %v7042_v14 }
  0xe1   :  { %v7106_v12 = vpop.f32.mrb[0].mxu0 }
  0xe2   :  { %v7108_v13 = vpop.f32.mrb[1].mxu0 }
  0xe3   :  { %6489 = vmatprep.mubr.msk.f32.mxu0 %vm122_vm1, %v7108_v13  ;;  %6494 = vmatprep.mubr.msk.f32.mxu1 %vm122_vm1, %v7108_v13 }
  0xe4   :  { %6490 = vmatmul.mubr.msk.f32.vlgmr.msra.gmra.mrb[2].mxu0 %vm122_vm1, %v7106_v12  ;;  %6495 = vmatmul.mubr.msk.f32.vlgmr.msra.gmra.mrb[0].mxu1 %vm122_vm1, %v7106_v12 }
  0xe5   :  { %6498 = vmatpush3.xpose.msk.msra.mxu1 %vm122_vm1, %v114_v11  ;;  %6499 = vmatprep.mubr.msk.f32.mxu1 %vm122_vm1, %v7108_v13 }
  0xe6   :  { %6507 = vmatprep.subr.mxu1 %v7042_v14  ;;  %6504 = vmatprep.mubr.msk.f32.mxu0 %vm7043_vm3, %v7042_v14 }
  0xe8   :  { %6500 = vmatmul.mubr.msk.f32.vlgmr.msra.gmra.mrb[2].mxu1 %vm122_vm1, %v7106_v12 }
  0xe9   :  { %6509 = vmatprep.mubr.msk.f32.mxu1 %vm7043_vm3, %v7042_v14 }
 0x1b7   :  { %v6491_v16 = vpop.f32.mrb[2].mxu0  ;;  %v6496_v17 = vpop.f32.mrb[0].mxu1 }
 0x1b8   :  { %v286_v19 = vadd.f32 %v6496_v17, %v6060_v15  ;;  %v198_v20 = vpop.f32.mrb[3].mxu0  ;;  %v280_v21 = vpop.f32.mrb[1].mxu1  ;;  %v204_v24 = vadd.f32 %v6491_v16, %v6056_v18 }
 0x1b9   :  { %v281_v22 = vadd.f32 %v6060_v15, %v280_v21  ;;  %v199_v26 = vadd.f32 %v6056_v18, %v198_v20 }
 0x1ba   :  { %6508 = vmatpush3.xpose.msk.msra.mxu1 %vm371_vm4, %v286_v19 }
 0x1bb   :  { %v6501_v25 = vpop.f32.mrb[2].mxu1  ;;  %6503 = vmatpush3.xpose.msk.msra.mxu0 %vm371_vm4, %v281_v22  ;;  %6517 = vmatprep.subr.mxu1 %v7042_v14 }
 0x1bc   :  { %v368_v27 = vadd.f32 %v6501_v25, %v6064_v23  ;;  %v362_v28 = vpop.f32.mrb[3].mxu1  ;;  %6512 = vmatprep.subr.mxu0 %v7042_v14 }
 0x1bd   :  { %v363_v29 = vadd.f32 %v6064_v23, %v362_v28  ;;  %6510 = vmatmul.mubr.msk.f32.vlgmr.msra.gmra.mrb[4].mxu1 %vm371_vm4, %v204_v24 }
 0x1be   :  { %6505 = vmatmul.mubr.msk.f32.vlgmr.msra.gmra.mrb[4].mxu0 %vm371_vm4, %v199_v26  ;;  %6518 = vmatpush3.msra.mxu1 %v368_v27 }
 0x1bf   :  { %6513 = vmatpush3.msra.mxu0 %v363_v29  ;;  %6519 = vmatprep.mubr.msk.f32.mxu1 %vm7043_vm3, %v7042_v14 }
 0x1c0   :  { %6514 = vmatprep.mubr.msk.f32.mxu0 %vm7043_vm3, %v7042_v14  ;;  %6527 = vmatprep.subr.msk.mxu1 %vm122_vm1, %v694_v50 }
 0x1c1   :  { %6522 = vmatprep.subr.msk.mxu0 %vm122_vm1, %v693_v51 }
 0x290   :  { %v520_v31 = vpop.f32.mrb[4].mxu1 }
 0x291   :  { %v521_v33 = vadd.f32 %v520_v31, %v7151_v30  ;;  %v444_v34 = vpop.f32.mrb[4].mxu0  ;;  %v6511_v35 = vpop.f32.mrb[5].mxu1 }
 0x292   :  { %v6506_v36 = vpop.f32.mrb[5].mxu0  ;;  %v445_v37 = vadd.f32 %v444_v34, %v7156_v32 }
 0x293   :  { %v527_v38 = vsel %vm371_vm4, %v521_v33, -inf }
 0x294   :  { %528 = vmax.xlane.f32.xlu0 %v527_v38  ;;  %v524_v39 = vsel %vm371_vm4, %v445_v37, -inf }
 0x298   :  { %525 = vmax.xlane.f32.xlu0 %v524_v39 }
 0x321   :  { %v529_v40 = vpop.xlane.xlu0 %528 }
 0x322   :  { %v531_v41 = vsub.f32 %v521_v33, %v529_v40 }
 0x324   :  { %v534_v42 = vmul.f32 1.442695, %v531_v41 }
 0x325   :  { %v526_v43 = vpop.xlane.xlu0 %525 }
 0x326   :  { %6956 = vpow2.f32 %v534_v42  ;;  %v530_v44 = vsub.f32 %v445_v37, %v526_v43  ;;  %v1428_v37 = vld [vmem:[%s7819_s2 + $0x10] sm:$0xff] }
 0x328   :  { %v532_v45 = vmul.f32 1.442695, %v530_v44  ;;  %v1429_v44 = vld [vmem:[%s7819_s2 + $0x30] sm:$0xff] }
 0x32a   :  { %6958 = vpow2.f32 %v532_v45  ;;  %v1265_v45 = vld [vmem:[%s7819_s2 + $0x68] sm:$0xff] }
 0x330   :  { %v6957_v46 = vpop.eup %6956 }
 0x331   :  { %v539_v47 = vsel %vm371_vm4, %v6957_v46, 0.0 }
 0x332   :  { %540 = vadd.xlane.f32.xlu1 %v539_v47 }
 0x334   :  { %v6959_v48 = vpop.eup %6958 }
 0x335   :  { %v536_v49 = vsel %vm371_vm4, %v6959_v48, 0.0 }
 0x336   :  { %537 = vadd.xlane.f32.xlu1 %v536_v49 }
 0x3bf   :  { %v541_v52 = vpop.xlane.xlu1 %540 }
 0x3c0   :  { %6960 = vrcp.f32 %v541_v52 }
 0x3c3   :  { %v538_v53 = vpop.xlane.xlu1 %537 }
 0x3c4   :  { %6962 = vrcp.f32 %v538_v53 }
 0x3ca   :  { %v6961_v54 = vpop.eup %6960 }
 0x3cb   :  { %v545_v55 = vmul.f32 %v6961_v54, %v6957_v46  ;;  %v692_v46 = vld [vmem:[%s7819_s2 + $0x60] sm:$0xff]  ;;  %v6100_v54 = vld [vmem:[%s7817_s3 + $0x56] ss:$0 sm:$0xff] }
 0x3cd   :  { %6520 = vmatmul.mubr.msk.f32.vlgmr.msra.gmra.mrb[6].mxu1 %vm371_vm4, %v545_v55 }
 0x3ce   :  { %v6963_v56 = vpop.eup %6962  ;;  %6528 = vmatpush3.xpose.msk.msra.mxu1 %vm122_vm1, %v694_v50  ;;  %6529 = vmatprep.mubr.msk.f32.mxu1 %vm122_vm1, %v7108_v13 }
 0x3cf   :  { %v543_v57 = vmul.f32 %v6963_v56, %v6959_v48  ;;  %6537 = vmatprep.subr.mxu1 %v7042_v14 }
 0x3d1   :  { %6515 = vmatmul.mubr.msk.f32.vlgmr.msra.gmra.mrb[6].mxu0 %vm371_vm4, %v543_v57  ;;  %6530 = vmatmul.mubr.msk.f32.vlgmr.msra.gmra.mrb[8].mxu1 %vm122_vm1, %v7106_v12 }
 0x3d2   :  { %6523 = vmatpush3.xpose.msk.msra.mxu0 %vm122_vm1, %v693_v51  ;;  %6524 = vmatprep.mubr.msk.f32.mxu0 %vm122_vm1, %v7108_v13  ;;  %v1430_v51 = vld [vmem:[%s7819_s2 + $0x50] sm:$0xff] }
 0x3d3   :  { %6532 = vmatprep.subr.msk.mxu0 %vm122_vm1, %v695_v58  ;;  %6539 = vmatprep.mubr.msk.f32.mxu1 %vm7043_vm3, %v7042_v14 }
 0x3d5   :  { %6525 = vmatmul.mubr.msk.f32.vlgmr.msra.gmra.mrb[8].mxu0 %vm122_vm1, %v7106_v12 }
 0x3d6   :  { %6533 = vmatpush3.xpose.msk.msra.mxu0 %vm122_vm1, %v695_v58  ;;  %6534 = vmatprep.mubr.msk.f32.mxu0 %vm122_vm1, %v7108_v13  ;;  %v6096_v58 = vld [vmem:[%s7817_s3 + $0x52] ss:$0 sm:$0xff] }
 0x3d7   :  { %6542 = vmatprep.subr.mxu0 %v7042_v14 }
 0x3d9   :  { %6535 = vmatmul.mubr.msk.f32.vlgmr.msra.gmra.mrb[10].mxu0 %vm122_vm1, %v7106_v12 }
 0x3da   :  { %6544 = vmatprep.mubr.msk.f32.mxu0 %vm7043_vm3, %v7042_v14 }
 0x4a0   :  { %v7199_v59 = vpop.f32.mrb[6].mxu1 }
 0x4a1   :  { %v6521_v60 = vpop.f32.mrb[7].mxu1 }
 0x4a4   :  { %v7204_v62 = vpop.f32.mrb[6].mxu0  ;;  %v6531_v63 = vpop.f32.mrb[8].mxu1 }
 0x4a5   :  { %v860_v0 = vadd.f32 %v6531_v63, %v6078_v61  ;;  %v6516_v1 = vpop.f32.mrb[7].mxu0  ;;  %v854_v2 = vpop.f32.mrb[9].mxu1 }
 0x4a6   :  { %v855_v3 = vadd.f32 %v6078_v61, %v854_v2 }
 0x4a7   :  { %6543 = vmatpush3.xpose.msk.msra.mxu0 %vm371_vm4, %v860_v0 }
 0x4a8   :  { %v6526_v5 = vpop.f32.mrb[8].mxu0  ;;  %6538 = vmatpush3.xpose.msk.msra.mxu1 %vm371_vm4, %v855_v3  ;;  %6552 = vmatprep.subr.mxu0 %v7042_v14 }
 0x4a9   :  { %v778_v6 = vadd.f32 %v6526_v5, %v6074_v4  ;;  %v772_v7 = vpop.f32.mrb[9].mxu0  ;;  %6547 = vmatprep.subr.mxu1 %v7042_v14 }
 0x4aa   :  { %v773_v8 = vadd.f32 %v6074_v4, %v772_v7 }
 0x4ab   :  { %6545 = vmatmul.mubr.msk.f32.vlgmr.msra.gmra.mrb[12].mxu0 %vm371_vm4, %v778_v6 }
 0x4ac   :  { %v6536_v10 = vpop.f32.mrb[10].mxu0  ;;  %6540 = vmatmul.mubr.msk.f32.vlgmr.msra.gmra.mrb[10].mxu1 %vm371_vm4, %v773_v8  ;;  %6554 = vmatprep.mubr.msk.f32.mxu0 %vm7043_vm3, %v7042_v14 }
 0x4ad   :  { %v942_v11 = vadd.f32 %v6536_v10, %v6082_v9  ;;  %v936_v15 = vpop.f32.mrb[11].mxu0  ;;  %6549 = vmatprep.mubr.msk.f32.mxu1 %vm7043_vm3, %v7042_v14 }
 0x4ae   :  { %v937_v16 = vadd.f32 %v6082_v9, %v936_v15 }
 0x4af   :  { %6553 = vmatpush3.msra.mxu0 %v942_v11 }
 0x4b0   :  { %6548 = vmatpush3.msra.mxu1 %v937_v16  ;;  %6567 = vmatprep.subr.msk.mxu0 %vm122_vm1, %v1428_v37 }
 0x4b1   :  { %6557 = vmatprep.subr.mxu1 %v1265_v45 }
 0x57e   :  { %v1093_v17 = vpop.f32.mrb[12].mxu0 }
 0x57f   :  { %v1094_v18 = vadd.f32 %v1093_v17, %v7151_v30  ;;  %v1017_v19 = vpop.f32.mrb[10].mxu1  ;;  %v6546_v20 = vpop.f32.mrb[13].mxu0 }
 0x580   :  { %v1018_v21 = vadd.f32 %v1017_v19, %v7156_v32  ;;  %v6541_v22 = vpop.f32.mrb[11].mxu1 }
 0x581   :  { %v1100_v23 = vsel %vm371_vm4, %v1094_v18, -inf }
 0x582   :  { %1101 = vmax.xlane.f32.xlu0 %v1100_v23  ;;  %v1097_v24 = vsel %vm371_vm4, %v1018_v21, -inf }
 0x583   :  { %1098 = vmax.xlane.f32.xlu1 %v1097_v24  ;;  %v2084_v24 = vld [vmem:[%s7819_s2 + $0x18] sm:$0xff] }
 0x60f   :  { %v1102_v25 = vpop.xlane.xlu0 %1101 }
 0x610   :  { %v1104_v26 = vsub.f32 %v1094_v18, %v1102_v25  ;;  %v1099_v27 = vpop.xlane.xlu1 %1098  ;;  %v2000_v25 = vld [vmem:[%s7819_s2 + $0x70] sm:$0xff] }
 0x611   :  { %v1103_v28 = vsub.f32 %v1018_v21, %v1099_v27 }
 0x612   :  { %v1107_v29 = vmul.f32 1.442695, %v1104_v26 }
 0x613   :  { %v1105_v31 = vmul.f32 1.442695, %v1103_v28 }
 0x614   :  { %6964 = vpow2.f32 %v1107_v29 }
 0x615   :  { %6966 = vpow2.f32 %v1105_v31  ;;  %v2085_v31 = vld [vmem:[%s7819_s2 + $0x38] sm:$0xff] }
 0x61e   :  { %v6965_v33 = vpop.eup %6964 }
 0x61f   :  { %v6967_v34 = vpop.eup %6966  ;;  %v1112_v35 = vsel %vm371_vm4, %v6965_v33, 0.0 }
 0x620   :  { %1113 = vadd.xlane.f32.xlu0 %v1112_v35  ;;  %v1109_v36 = vsel %vm371_vm4, %v6967_v34, 0.0  ;;  %v2086_v35 = vld [vmem:[%s7819_s2 + $0x58] sm:$0xff] }
 0x621   :  { %1110 = vadd.xlane.f32.xlu1 %v1109_v36 }
 0x6ad   :  { %v1114_v38 = vpop.xlane.xlu0 %1113 }
 0x6ae   :  { %6968 = vrcp.f32 %v1114_v38  ;;  %v1111_v39 = vpop.xlane.xlu1 %1110 }
 0x6af   :  { %6970 = vrcp.f32 %v1111_v39 }
 0x6b8   :  { %v6969_v40 = vpop.eup %6968 }
 0x6b9   :  { %v6971_v41 = vpop.eup %6970  ;;  %v1118_v42 = vmul.f32 %v6969_v40, %v6965_v33 }
 0x6ba   :  { %v1116_v43 = vmul.f32 %v6971_v41, %v6967_v34 }
 0x6bb   :  { %6555 = vmatmul.mubr.msk.f32.vlgmr.msra.gmra.mrb[14].mxu0 %vm371_vm4, %v1118_v42  ;;  %v6120_v42 = vld [vmem:[%s7817_s3 + $0x57] ss:$0 sm:$0xff] }
 0x6bc   :  { %6550 = vmatmul.mubr.msk.f32.vlgmr.msra.gmra.mrb[12].mxu1 %vm371_vm4, %v1116_v43  ;;  %6568 = vmatpush3.xpose.msk.msra.mxu0 %vm122_vm1, %v1428_v37 }
 0x6bd   :  { %6569 = vmatprep.mubr.msk.f32.mxu0 %vm122_vm1, %v7108_v13  ;;  %6572 = vmatprep.subr.msk.mxu0 %vm122_vm1, %v1429_v44 }
 0x6be   :  { %6558 = vmatpush3.msra.mxu1 %v1265_v45 }
 0x6bf   :  { %6570 = vmatmul.mubr.msk.f32.vlgmr.msra.gmra.mrb[16].mxu0 %vm122_vm1, %v7106_v12  ;;  %6562 = vmatprep.subr.mxu1 %v692_v46 }
 0x6c0   :  { %6573 = vmatpush3.xpose.msk.msra.mxu0 %vm122_vm1, %v1429_v44  ;;  %6574 = vmatprep.mubr.msk.f32.mxu0 %vm122_vm1, %v7108_v13  ;;  %v6116_v44 = vld [vmem:[%s7817_s3 + $0x53] ss:$0 sm:$0xff] }
 0x6c1   :  { %6582 = vmatprep.subr.mxu0 %v7042_v14 }
 0x6c3   :  { %6575 = vmatmul.mubr.msk.f32.vlgmr.msra.gmra.mrb[18].mxu0 %vm122_vm1, %v7106_v12 }
 0x6c4   :  { %6584 = vmatprep.mubr.msk.f32.mxu0 %vm7043_vm3, %v7042_v14 }
 0x78e   :  { %v1261_v47 = vpop.f32.mrb[14].mxu0 }
 0x78f   :  { %v1188_v48 = vpop.f32.mrb[12].mxu1  ;;  %v6556_v49 = vpop.f32.mrb[15].mxu0 }
 0x790   :  { %v6551_v50 = vpop.f32.mrb[13].mxu1  ;;  %6559 = vmatprep.mubr.msk.f32.mxu1 %vm371_vm4, %v1188_v48 }
 0x791   :  { %6560 = vmatmul.mubr.msk.f32.vlgmr.msra.gmra.mrb[14].mxu1 %vm371_vm4, %v1261_v47  ;;  %v6124_v50 = vld [vmem:[%s7817_s3 + $0x5b] ss:$0 sm:$0xff] }
 0x792   :  { %6563 = vmatpush3.msra.mxu1 %v692_v46  ;;  %6564 = vmatprep.mubr.msk.f32.mxu1 %vm371_vm4, %v7204_v62  ;;  %v6571_v52 = vpop.f32.mrb[16].mxu0  ;;  %v6104_v62 = vld [vmem:[%s7817_s3 + $0x5a] ss:$0 sm:$0xff] }
 0x793   :  { %v1507_v53 = vpop.f32.mrb[17].mxu0  ;;  %6577 = vmatprep.subr.msk.mxu1 %vm122_vm1, %v1430_v51 }
 0x794   :  { %v1508_v60 = vadd.f32 %v6096_v58, %v1507_v53 }
 0x796   :  { %v6576_v55 = vpop.f32.mrb[18].mxu0 }
 0x797   :  { %v1589_v56 = vpop.f32.mrb[19].mxu0  ;;  %v1595_v61 = vadd.f32 %v6576_v55, %v6100_v54 }
 0x798   :  { %v1590_v57 = vadd.f32 %v6100_v54, %v1589_v56 }
 0x799   :  { %6565 = vmatmul.mubr.msk.f32.vlgmr.msra.gmra.mrb[14].mxu1 %vm371_vm4, %v7199_v59  ;;  %v1513_v59 = vadd.f32 %v6571_v52, %v6096_v58 }
 0x79a   :  { %6578 = vmatpush3.xpose.msk.msra.mxu1 %vm122_vm1, %v1430_v51  ;;  %6579 = vmatprep.mubr.msk.f32.mxu1 %vm122_vm1, %v7108_v13 }
 0x79b   :  { %6583 = vmatpush3.xpose.msk.msra.mxu0 %vm371_vm4, %v1590_v57  ;;  %6587 = vmatprep.subr.mxu1 %v7042_v14 }
 0x79c   :  { %6592 = vmatprep.subr.mxu0 %v7042_v14 }
 0x79d   :  { %6580 = vmatmul.mubr.msk.f32.vlgmr.msra.gmra.mrb[16].mxu1 %vm122_vm1, %v7106_v12 }
 0x79e   :  { %6585 = vmatmul.mubr.msk.f32.vlgmr.msra.gmra.mrb[20].mxu0 %vm371_vm4, %v1508_v60  ;;  %6588 = vmatpush3.xpose.msk.msra.mxu1 %vm371_vm4, %v1595_v61 }
 0x79f   :  { %6589 = vmatprep.mubr.msk.f32.mxu1 %vm7043_vm3, %v7042_v14  ;;  %6597 = vmatprep.subr.mxu1 %v7042_v14 }
 0x7a0   :  { %6594 = vmatprep.mubr.msk.f32.mxu0 %vm7043_vm3, %v7042_v14 }
 0x7a1   :  { %6590 = vmatmul.mubr.msk.f32.vlgmr.msra.gmra.mrb[18].mxu1 %vm371_vm4, %v1513_v59 }
 0x7a2   :  { %6599 = vmatprep.mubr.msk.f32.mxu1 %vm7043_vm3, %v7042_v14 }
 0x870   :  { %v6581_v63 = vpop.f32.mrb[16].mxu1 }
 0x871   :  { %v1677_v0 = vadd.f32 %v6581_v63, %v6104_v62  ;;  %v1752_v1 = vpop.f32.mrb[20].mxu0  ;;  %v1671_v2 = vpop.f32.mrb[17].mxu1 }
 0x872   :  { %v1753_v3 = vadd.f32 %v1752_v1, %v7156_v32  ;;  %v1672_v4 = vadd.f32 %v6104_v62, %v1671_v2  ;;  %v6586_v5 = vpop.f32.mrb[21].mxu0 }
 0x873   :  { %6598 = vmatpush3.msra.mxu1 %v1677_v0 }
 0x874   :  { %v1832_v6 = vsel %vm371_vm4, %v1753_v3, -inf  ;;  %v1828_v7 = vpop.f32.mrb[18].mxu1  ;;  %6593 = vmatpush3.msra.mxu0 %v1672_v4  ;;  %6602 = vmatprep.subr.mxu1 %v2000_v25 }
 0x875   :  { %1833 = vmax.xlane.f32.xlu0 %v1832_v6  ;;  %v1829_v8 = vadd.f32 %v1828_v7, %v7151_v30  ;;  %v6591_v9 = vpop.f32.mrb[19].mxu1  ;;  %6607 = vmatprep.subr.msk.mxu0 %vm122_vm1, %v2084_v24 }
 0x876   :  { %v2656_v9 = vld [vmem:[%s7819_s2 + $0x78] sm:$0xff] }
 0x877   :  { %v1835_v10 = vsel %vm371_vm4, %v1829_v8, -inf }
 0x878   :  { %1836 = vmax.xlane.f32.xlu1 %v1835_v10 }
 0x902   :  { %v1834_v11 = vpop.xlane.xlu0 %1833 }
 0x903   :  { %v1838_v15 = vsub.f32 %v1753_v3, %v1834_v11 }
 0x905   :  { %v1840_v16 = vmul.f32 1.442695, %v1838_v15  ;;  %v1837_v17 = vpop.xlane.xlu1 %1836 }
 0x906   :  { %v1839_v18 = vsub.f32 %v1829_v8, %v1837_v17 }
 0x907   :  { %6972 = vpow2.f32 %v1840_v16 }
 0x908   :  { %v1842_v19 = vmul.f32 1.442695, %v1839_v18 }
 0x90a   :  { %6974 = vpow2.f32 %v1842_v19 }
 0x911   :  { %v6973_v20 = vpop.eup %6972 }
 0x912   :  { %v1844_v21 = vsel %vm371_vm4, %v6973_v20, 0.0 }
 0x913   :  { %1845 = vadd.xlane.f32.xlu0 %v1844_v21 }
 0x914   :  { %v6975_v22 = vpop.eup %6974 }
 0x915   :  { %v1847_v23 = vsel %vm371_vm4, %v6975_v22, 0.0 }
 0x916   :  { %1848 = vadd.xlane.f32.xlu1 %v1847_v23  ;;  %v2792_v23 = vld [vmem:[%s7819_s2 + $0x80] sm:$0xff] }
 0x9a0   :  { %v1846_v26 = vpop.xlane.xlu0 %1845 }
 0x9a1   :  { %6976 = vrcp.f32 %v1846_v26  ;;  %v2794_v26 = vld [vmem:[%s7819_s2 + $0x90] sm:$0xff] }
 0x9a3   :  { %v1849_v27 = vpop.xlane.xlu1 %1848 }
 0x9a4   :  { %6978 = vrcp.f32 %v1849_v27  ;;  %v2795_v27 = vld [vmem:[%s7819_s2 + $0x98] sm:$0xff] }
 0x9ab   :  { %v6977_v28 = vpop.eup %6976 }
 0x9ac   :  { %v1851_v29 = vmul.f32 %v6977_v28, %v6973_v20  ;;  %v6890_v28 = vpack.c.bf16 %v2795_v27, %v2794_v26 }
 0x9ae   :  { %v6979_v33 = vpop.eup %6978  ;;  %6595 = vmatmul.mubr.msk.f32.vlgmr.msra.gmra.mrb[22].mxu0 %vm371_vm4, %v1851_v29  ;;  %v6136_v29 = vld [vmem:[%s7817_s3 + $0x5c] ss:$0 sm:$0xff] }
 0x9af   :  { %v1853_v34 = vmul.f32 %v6979_v33, %v6975_v22  ;;  %6608 = vmatpush3.xpose.msk.msra.mxu0 %vm122_vm1, %v2084_v24  ;;  %6609 = vmatprep.mubr.msk.f32.mxu0 %vm122_vm1, %v7108_v13  ;;  %v2793_v24 = vld [vmem:[%s7819_s2 + $0x88] sm:$0xff] }
 0x9b0   :  { %6612 = vmatprep.subr.msk.mxu0 %vm122_vm1, %v2085_v31 }
 0x9b1   :  { %6600 = vmatmul.mubr.msk.f32.vlgmr.msra.gmra.mrb[20].mxu1 %vm371_vm4, %v1853_v34 }
 0x9b2   :  { %6610 = vmatmul.mubr.msk.f32.vlgmr.msra.gmra.mrb[24].mxu0 %vm122_vm1, %v7106_v12  ;;  %6603 = vmatpush3.msra.mxu1 %v2000_v25  ;;  %v6886_v25 = vpack.c.bf16 %v2793_v24, %v2792_v23 }
 0x9b3   :  { %6613 = vmatpush3.xpose.msk.msra.mxu0 %vm122_vm1, %v2085_v31  ;;  %6614 = vmatprep.mubr.msk.f32.mxu0 %vm122_vm1, %v7108_v13 }
 0x9b4   :  { %6622 = vmatprep.subr.mxu0 %v7042_v14  ;;  %6617 = vmatprep.subr.msk.mxu1 %vm122_vm1, %v2086_v35 }
 0x9b6   :  { %6615 = vmatmul.mubr.msk.f32.vlgmr.msra.gmra.mrb[26].mxu0 %vm122_vm1, %v7106_v12 }
 0x9b7   :  { %6624 = vmatprep.mubr.msk.f32.mxu0 %vm7043_vm3, %v7042_v14 }
 0xa81   :  { %v1923_v36 = vpop.f32.mrb[22].mxu0 }
 0xa82   :  { %v6596_v37 = vpop.f32.mrb[23].mxu0  ;;  %6604 = vmatprep.mubr.msk.f32.mxu1 %vm371_vm4, %v1923_v36 }
 0xa84   :  { %v1996_v38 = vpop.f32.mrb[20].mxu1 }
 0xa85   :  { %v6611_v39 = vpop.f32.mrb[24].mxu0  ;;  %v6601_v40 = vpop.f32.mrb[21].mxu1  ;;  %6605 = vmatmul.mubr.msk.f32.vlgmr.msra.gmra.mrb[14].mxu1 %vm371_vm4, %v1996_v38 }
 0xa86   :  { %v2163_v41 = vpop.f32.mrb[25].mxu0  ;;  %6618 = vmatpush3.xpose.msk.msra.mxu1 %vm122_vm1, %v2086_v35  ;;  %6619 = vmatprep.mubr.msk.f32.mxu1 %vm122_vm1, %v7108_v13  ;;  %v2169_v48 = vadd.f32 %v6611_v39, %v6116_v44 }
 0xa87   :  { %6627 = vmatprep.subr.mxu1 %v7042_v14  ;;  %v2164_v49 = vadd.f32 %v6116_v44, %v2163_v41 }
 0xa89   :  { %v6616_v43 = vpop.f32.mrb[26].mxu0  ;;  %6620 = vmatmul.mubr.msk.f32.vlgmr.msra.gmra.mrb[22].mxu1 %vm122_vm1, %v7106_v12 }
 0xa8a   :  { %v2251_v45 = vadd.f32 %v6616_v43, %v6120_v42  ;;  %v2245_v46 = vpop.f32.mrb[27].mxu0  ;;  %6629 = vmatprep.mubr.msk.f32.mxu1 %vm7043_vm3, %v7042_v14 }
 0xa8b   :  { %v2246_v47 = vadd.f32 %v6120_v42, %v2245_v46 }
 0xa8c   :  { %6628 = vmatpush3.xpose.msk.msra.mxu1 %vm371_vm4, %v2251_v45 }
 0xa8d   :  { %6623 = vmatpush3.xpose.msk.msra.mxu0 %vm371_vm4, %v2246_v47  ;;  %6637 = vmatprep.subr.mxu1 %v7042_v14 }
 0xa8e   :  { %6632 = vmatprep.subr.mxu0 %v7042_v14 }
 0xa8f   :  { %6630 = vmatmul.mubr.msk.f32.vlgmr.msra.gmra.mrb[24].mxu1 %vm371_vm4, %v2169_v48 }
 0xa90   :  { %6625 = vmatmul.mubr.msk.f32.vlgmr.msra.gmra.mrb[28].mxu0 %vm371_vm4, %v2164_v49  ;;  %6639 = vmatprep.mubr.msk.f32.mxu1 %vm7043_vm3, %v7042_v14 }
 0xa91   :  { %6634 = vmatprep.mubr.msk.f32.mxu0 %vm7043_vm3, %v7042_v14 }
 0xb5c   :  { %v6621_v51 = vpop.f32.mrb[22].mxu1 }
 0xb5d   :  { %v2333_v52 = vadd.f32 %v6621_v51, %v6124_v50  ;;  %v2327_v53 = vpop.f32.mrb[23].mxu1 }
 0xb5e   :  { %v2328_v54 = vadd.f32 %v6124_v50, %v2327_v53 }
 0xb5f   :  { %6638 = vmatpush3.msra.mxu1 %v2333_v52 }
 0xb60   :  { %6633 = vmatpush3.msra.mxu0 %v2328_v54  ;;  %6642 = vmatprep.subr.mxu1 %v2656_v9 }
 0xb61   :  { %6887 = vmatprep.subr.bf16.mxu0 %v6886_v25 }
 0xb62   :  { %v2484_v55 = vpop.f32.mrb[24].mxu1 }
 0xb63   :  { %v2485_v56 = vadd.f32 %v2484_v55, %v7151_v30  ;;  %v2408_v57 = vpop.f32.mrb[28].mxu0  ;;  %v6631_v58 = vpop.f32.mrb[25].mxu1 }
 0xb64   :  { %v2409_v60 = vadd.f32 %v2408_v57, %v7156_v32  ;;  %v6626_v61 = vpop.f32.mrb[29].mxu0 }
 0xb65   :  { %v2491_v59 = vsel %vm371_vm4, %v2485_v56, -inf }
 0xb66   :  { %2492 = vmax.xlane.f32.xlu1 %v2491_v59  ;;  %v2488_v62 = vsel %vm371_vm4, %v2409_v60, -inf }
 0xb67   :  { %2489 = vmax.xlane.f32.xlu0 %v2488_v62  ;;  %v6137_v62 = vld [vmem:[%s7817_s3 + $0x5f] ss:$0 sm:$0xff] }
 0xbf3   :  { %v2493_v63 = vpop.xlane.xlu1 %2492 }
 0xbf4   :  { %v2495_v0 = vsub.f32 %v2485_v56, %v2493_v63  ;;  %v2490_v1 = vpop.xlane.xlu0 %2489 }
 0xbf5   :  { %v2494_v2 = vsub.f32 %v2409_v60, %v2490_v1  ;;  %v6138_v1 = vld [vmem:[%s7817_s3 + $0x60] ss:$0 sm:$0xff] }
 0xbf6   :  { %v2498_v3 = vmul.f32 1.442695, %v2495_v0 }
 0xbf7   :  { %v2496_v4 = vmul.f32 1.442695, %v2494_v2 }
 0xbf8   :  { %6980 = vpow2.f32 %v2498_v3 }
 0xbf9   :  { %6982 = vpow2.f32 %v2496_v4 }
 0xc02   :  { %v6981_v5 = vpop.eup %6980 }
 0xc03   :  { %v6983_v6 = vpop.eup %6982  ;;  %v2503_v7 = vsel %vm371_vm4, %v6981_v5, 0.0 }
 0xc04   :  { %2504 = vadd.xlane.f32.xlu1 %v2503_v7  ;;  %v2500_v8 = vsel %vm371_vm4, %v6983_v6, 0.0  ;;  %v2797_v7 = vld [vmem:[%s7819_s2 + $0xa8] sm:$0xff] }
 0xc05   :  { %2501 = vadd.xlane.f32.xlu0 %v2500_v8 }
 0xc91   :  { %v2505_v10 = vpop.xlane.xlu1 %2504 }
 0xc92   :  { %6984 = vrcp.f32 %v2505_v10  ;;  %v2502_v11 = vpop.xlane.xlu0 %2501  ;;  %v2799_v10 = vld [vmem:[%s7819_s2 + $0xb8] sm:$0xff] }
 0xc93   :  { %6986 = vrcp.f32 %v2502_v11 }
 0xc9c   :  { %v6985_v15 = vpop.eup %6984 }
 0xc9d   :  { %v6987_v16 = vpop.eup %6986  ;;  %v2509_v17 = vmul.f32 %v6985_v15, %v6981_v5  ;;  %v2800_v15 = vld [vmem:[%s7819_s2 + $0xc0] sm:$0xff] }
 0xc9e   :  { %v2507_v18 = vmul.f32 %v6987_v16, %v6983_v6  ;;  %v2796_v6 = vld [vmem:[%s7819_s2 + $0xa0] sm:$0xff]  ;;  %v2801_v16 = vld [vmem:[%s7819_s2 + $0xc8] sm:$0xff] }
 0xc9f   :  { %6640 = vmatmul.mubr.msk.f32.vlgmr.msra.gmra.mrb[26].mxu1 %vm371_vm4, %v2509_v17  ;;  %v6894_v8 = vpack.c.bf16 %v2797_v7, %v2796_v6  ;;  %v6902_v17 = vpack.c.bf16 %v2801_v16, %v2800_v15  ;;  %v6145_v7 = vld [vmem:[%s7817_s3 + $0x61] ss:$0 sm:$0xff] }
 0xca0   :  { %6635 = vmatmul.mubr.msk.f32.vlgmr.msra.gmra.mrb[30].mxu0 %vm371_vm4, %v2507_v18  ;;  %6643 = vmatpush3.msra.mxu1 %v2656_v9  ;;  %v2798_v9 = vld [vmem:[%s7819_s2 + $0xb0] sm:$0xff] }
 0xca1   :  { %6889 = vmatpush3.bf16.msra.mxu0 %v6886_v25  ;;  %6895 = vmatprep.subr.bf16.mxu1 %v6894_v8  ;;  %v6898_v11 = vpack.c.bf16 %v2799_v10, %v2798_v9  ;;  %v2802_v18 = vld [vmem:[%s7819_s2 + $0xd0] sm:$0xff]  ;;  %v6146_v10 = vld [vmem:[%s7817_s3 + $0x62] ss:$0 sm:$0xff] }
 0xca2   :  { %6891 = vmatprep.subr.bf16.mxu0 %v6890_v28 }
 0xca5   :  { %6893 = vmatpush3.bf16.msra.mxu0 %v6890_v28 }
 0xd72   :  { %v2652_v19 = vpop.f32.mrb[26].mxu1 }
 0xd73   :  { %v2579_v20 = vpop.f32.mrb[30].mxu0  ;;  %v6641_v21 = vpop.f32.mrb[27].mxu1 }
 0xd74   :  { %v6636_v22 = vpop.f32.mrb[31].mxu0  ;;  %6644 = vmatprep.mubr.msk.f32.mxu1 %vm371_vm4, %v2579_v20  ;;  %v6139_v21 = vld [vmem:[%s7817_s3 + $0x5d] ss:$0 sm:$0xff] }
 0xd75   :  { %6645 = vmatmul.mubr.msk.f32.vlgmr.msra.gmra.mrb[14].mxu1 %vm371_vm4, %v2652_v19  ;;  %v2803_v19 = vld [vmem:[%s7819_s2 + $0xd8] sm:$0xff] }
 0xd76   :  { %6897 = vmatpush3.bf16.msra.mxu1 %v6894_v8  ;;  %v6906_v20 = vpack.c.bf16 %v2803_v19, %v2802_v18  ;;  %v6149_v18 = vld [vmem:[%s7819_s2 + $0x120] sm:$0xff] }
 0xd77   :  { %6899 = vmatprep.subr.bf16.mxu1 %v6898_v11 }
 0xd7a   :  { %6901 = vmatpush3.bf16.msra.mxu1 %v6898_v11 }
 0xd7b   :  { %6903 = vmatprep.subr.bf16.mxu1 %v6902_v17 }
 0xd7e   :  { %6905 = vmatpush3.bf16.msra.mxu1 %v6902_v17 }
 0xd7f   :  { %6907 = vmatprep.subr.bf16.mxu1 %v6906_v20 }
 0xd82   :  { %6909 = vmatpush3.bf16.msra.mxu1 %v6906_v20 }
 0xd83   :  { %6697 = vmatprep.subr.mxu1 %v7042_v14 }
 0xe48   :  { %v6646_v31 = vpop.f32.mrb[14].mxu1 }
 0xe49   :  { %v2746_v33 = vadd.f32 %v6646_v31, %v6136_v29  ;;  %v2729_v34 = vpop.f32.mrb[15].mxu1 }
 0xe4a   :  { %v2745_v35 = vadd.f32 %v6136_v29, %v2729_v34 }
 0xe4b   :  { %v2748_v36 = vadd.f32 %v7106_v12, %v2746_v33 }
 0xe4c   :  { %v2747_v37 = vadd.f32 %v2745_v35, %v7108_v13 }
 0xe4d   :  { %v2752_v38 = vsel %vm122_vm1, %v2748_v36, 0.0 }
 0xe4e   :  { %v2751_v39 = vsel %vm122_vm1, %v2747_v37, 0.0 }
 0xe4f   :  { %v2753_v40 = vadd.f32 %v2752_v38, %v2751_v39  ;;  %v6147_v38 = vld [vmem:[%s7819_s2 + $0xe0] sm:$0xff] }
 0xe50   :  { %6677 = vmatprep.subr.msk.mxu0 %vm122_vm1, %v6147_v38  ;;  %v6148_v39 = vld [vmem:[%s7819_s2 + $0x100] sm:$0xff] }
 0xe51   :  { %v2754_v41 = vrot.slane %v2753_v40, 4 }
 0xe53   :  { %v2755_v42 = vadd.f32 %v2754_v41, %v2753_v40  ;;  %v6142_v40 = vld [vmem:[%s7817_s3 + $0x5e] ss:$0 sm:$0xff] }
 0xe55   :  { %v2756_v43 = vrot.slane %v2755_v42, 2 }
 0xe57   :  { %v2757_v44 = vadd.f32 %v2756_v43, %v2755_v42 }
 0xe59   :  { %v2758_v45 = vrot.slane %v2757_v44, 1 }
 0xe5b   :  { %v2759_v46 = vadd.f32 %v2758_v45, %v2757_v44 }
 0xe5d   :  { %v2761_v47 = vmul.f32 0.0625, %v2759_v46 }
 0xe5f   :  { %v2762_v48 = vsub.f32 %v2747_v37, %v2761_v47  ;;  %v2763_v49 = vsub.f32 %v2748_v36, %v2761_v47 }
 0xe61   :  { %v2764_v50 = vmul.f32 %v2762_v48, %v2762_v48  ;;  %v2765_v51 = vmul.f32 %v2763_v49, %v2763_v49 }
 0xe63   :  { %v2766_v12 = vsel %vm122_vm1, %v2764_v50, 0.0  ;;  %v2767_v13 = vsel %vm122_vm1, %v2765_v51, 0.0 }
 0xe64   :  { %v2768_v52 = vadd.f32 %v2767_v13, %v2766_v12 }
 0xe66   :  { %v2769_v53 = vrot.slane %v2768_v52, 4 }
 0xe68   :  { %v2770_v54 = vadd.f32 %v2769_v53, %v2768_v52 }
 0xe6a   :  { %v2771_v55 = vrot.slane %v2770_v54, 2 }
 0xe6c   :  { %v2772_v56 = vadd.f32 %v2771_v55, %v2770_v54 }
 0xe6e   :  { %v2773_v57 = vrot.slane %v2772_v56, 1 }
 0xe70   :  { %v2774_v58 = vadd.f32 %v2773_v57, %v2772_v56 }
 0xe72   :  { %v2775_v60 = vmul.f32 0.0625, %v2774_v58 }
 0xe74   :  { %v2776_v61 = vadd.f32 1e-05, %v2775_v60 }
 0xe76   :  { %6988 = vrsqrt.f32 %v2776_v61 }
 0xe80   :  { %v6989_v59 = vpop.eup %6988 }
 0xe81   :  { %v2778_v63 = vmul.f32 %v6989_v59, %v2762_v48  ;;  %v2779_v0 = vmul.f32 %v6989_v59, %v2763_v49 }
 0xe83   :  { %v2784_v2 = vmul.f32 %v6137_v62, %v2778_v63  ;;  %v2785_v3 = vmul.f32 %v6137_v62, %v2779_v0 }
 0xe85   :  { %v2790_v4 = vadd.f32 %v6138_v1, %v2784_v2  ;;  %v2791_v5 = vadd.f32 %v6138_v1, %v2785_v3 }
 0xe87   :  { %6655 = vmatprep.mubr.msk.f32.mxu0 %vm122_vm1, %v2790_v4 }
 0xe88   :  { %6656 = vmatmul.mubr.msk.f32.vlgmr.msra.gmra.mrb[32].mxu0 %vm122_vm1, %v2791_v5 }
 0xe89   :  { %6678 = vmatpush3.xpose.msk.msra.mxu0 %vm122_vm1, %v6147_v38 }
 0xe8a   :  { %6682 = vmatprep.subr.msk.mxu0 %vm122_vm1, %v6148_v39 }
 0xf5b   :  { %v6657_v22 = vpop.f32.mrb[32].mxu0 }
 0xf5c   :  { %v2887_v23 = vadd.f32 %v6657_v22, %v6139_v21  ;;  %v2881_v24 = vpop.f32.mrb[33].mxu0 }
 0xf5d   :  { %v2882_v25 = vadd.f32 %v6139_v21, %v2881_v24  ;;  %v6154_v21 = vld [vmem:[%s7817_s3 + $0x6c] ss:$0 sm:$0xff] }
 0xf5e   :  { %v2893_v26 = vmul.f32 0.70710677, %v2887_v23  ;;  %v2891_v35 = vmul.f32 0.5, %v2887_v23  ;;  %v6150_v23 = vld [vmem:[%s7817_s3 + $0x68] ss:$0 sm:$0xff] }
 0xf5f   :  { %v2892_v27 = vmul.f32 0.70710677, %v2882_v25  ;;  %v2890_v33 = vmul.f32 0.5, %v2882_v25 }
 0xf60   :  { %6990 = verf.f32 %v2893_v26 }
 0xf61   :  { %6992 = verf.f32 %v2892_v27  ;;  %v6158_v27 = vld [vmem:[%s7817_s3 + $0x70] ss:$0 sm:$0xff] }
 0xf6a   :  { %v6991_v28 = vpop.eup %6990 }
 0xf6b   :  { %v6993_v29 = vpop.eup %6992  ;;  %v2897_v31 = vadd.f32 1.0, %v6991_v28 }
 0xf6c   :  { %v2896_v34 = vadd.f32 1.0, %v6993_v29 }
 0xf6d   :  { %v2899_v37 = vmul.f32 %v2897_v31, %v2891_v35 }
 0xf6e   :  { %v2898_v36 = vmul.f32 %v2896_v34, %v2890_v33 }
 0xf70   :  { %6674 = vmatprep.mubr.msk.f32.mxu1 %vm2905_vm5, %v2898_v36 }
 0xf71   :  { %6675 = vmatmul.mubr.msk.f32.vlgmr.msra.gmra.mrb[28].mxu1 %vm2905_vm5, %v2899_v37 }
 0xf72   :  { %6699 = vmatprep.mubr.msk.f32.mxu1 %vm7043_vm3, %v7042_v14 }
0x1044   :  { %v6676_v41 = vpop.f32.mrb[28].mxu1 }
0x1045   :  { %v2984_v42 = vadd.f32 %v6676_v41, %v6142_v40  ;;  %v2978_v43 = vpop.f32.mrb[29].mxu1 }
0x1046   :  { %v2979_v44 = vadd.f32 %v6142_v40, %v2978_v43 }
0x1047   :  { %v2988_v45 = vadd.f32 %v2984_v42, %v2791_v5 }
0x1048   :  { %v2987_v46 = vadd.f32 %v2979_v44, %v2790_v4 }
0x1049   :  { %v2992_v47 = vsel %vm122_vm1, %v2988_v45, 0.0 }
0x104a   :  { %v2991_v48 = vsel %vm122_vm1, %v2987_v46, 0.0 }
0x104b   :  { %v2993_v49 = vadd.f32 %v2992_v47, %v2991_v48 }
0x104d   :  { %v2994_v50 = vrot.slane %v2993_v49, 4 }
0x104f   :  { %v2995_v51 = vadd.f32 %v2994_v50, %v2993_v49 }
0x1051   :  { %v2996_v12 = vrot.slane %v2995_v51, 2 }
0x1053   :  { %v2997_v13 = vadd.f32 %v2996_v12, %v2995_v51  ;;  %v6170_v12 = vld [vmem:[%s7819_s2 + $0x108] sm:$0xff] }
0x1055   :  { %v2998_v52 = vrot.slane %v2997_v13, 1 }
0x1057   :  { %v2999_v53 = vadd.f32 %v2998_v52, %v2997_v13  ;;  %v6169_v13 = vld [vmem:[%s7819_s2 + $0xe8] sm:$0xff] }
0x1059   :  { %v3000_v54 = vmul.f32 0.0625, %v2999_v53 }
0x105b   :  { %v3001_v55 = vsub.f32 %v2987_v46, %v3000_v54  ;;  %v3002_v56 = vsub.f32 %v2988_v45, %v3000_v54 }
0x105d   :  { %v3003_v57 = vmul.f32 %v3001_v55, %v3001_v55  ;;  %v3004_v58 = vmul.f32 %v3002_v56, %v3002_v56 }
0x105f   :  { %v3005_v60 = vsel %vm122_vm1, %v3003_v57, 0.0  ;;  %v3006_v61 = vsel %vm122_vm1, %v3004_v58, 0.0  ;;  %v6171_v58 = vld [vmem:[%s7819_s2 + $0x128] sm:$0xff] }
0x1060   :  { %v3007_v59 = vadd.f32 %v3006_v61, %v3005_v60 }
0x1062   :  { %v3008_v62 = vrot.slane %v3007_v59, 4 }
0x1064   :  { %v3009_v63 = vadd.f32 %v3008_v62, %v3007_v59 }
0x1066   :  { %v3010_v0 = vrot.slane %v3009_v63, 2 }
0x1068   :  { %v3011_v1 = vadd.f32 %v3010_v0, %v3009_v63  ;;  %v6176_v63 = vld [vmem:[%s7817_s3 + $0x6d] ss:$0 sm:$0xff] }
0x106a   :  { %v3012_v2 = vrot.slane %v3011_v1, 1 }
0x106c   :  { %v3013_v3 = vadd.f32 %v3012_v2, %v3011_v1 }
0x106e   :  { %v3014_v4 = vmul.f32 0.0625, %v3013_v3  ;;  %v6172_v3 = vld [vmem:[%s7817_s3 + $0x69] ss:$0 sm:$0xff] }
0x1070   :  { %v3015_v5 = vadd.f32 1e-05, %v3014_v4 }
0x1072   :  { %6994 = vrsqrt.f32 %v3015_v5 }
0x107c   :  { %v6995_v6 = vpop.eup %6994 }
0x107d   :  { %v3017_v8 = vmul.f32 %v6995_v6, %v3001_v55  ;;  %v3018_v9 = vmul.f32 %v6995_v6, %v3002_v56 }
0x107f   :  { %v3023_v11 = vmul.f32 %v6145_v7, %v3017_v8  ;;  %v3024_v15 = vmul.f32 %v6145_v7, %v3018_v9  ;;  %v6180_v7 = vld [vmem:[%s7817_s3 + $0x71] ss:$0 sm:$0xff] }
0x1081   :  { %v7455_v16 = vadd.f32 %v6146_v10, %v3023_v11  ;;  %v7457_v17 = vadd.f32 %v6146_v10, %v3024_v15 }
0x1083   :  { %6679 = vmatprep.mubr.msk.f32.mxu0 %vm122_vm1, %v7455_v16 }
0x1084   :  { %6680 = vmatmul.mubr.msk.f32.vlgmr.msra.gmra.mrb[34].mxu0 %vm122_vm1, %v7457_v17 }
0x1085   :  { %6683 = vmatpush3.xpose.msk.msra.mxu0 %vm122_vm1, %v6148_v39  ;;  %6684 = vmatprep.mubr.msk.f32.mxu0 %vm122_vm1, %v7455_v16 }
0x1086   :  { %6687 = vmatprep.subr.msk.mxu0 %vm122_vm1, %v6149_v18 }
0x1088   :  { %6685 = vmatmul.mubr.msk.f32.vlgmr.msra.gmra.mrb[36].mxu0 %vm122_vm1, %v7457_v17 }
0x1089   :  { %6688 = vmatpush3.xpose.msk.msra.mxu0 %vm122_vm1, %v6149_v18  ;;  %6689 = vmatprep.mubr.msk.f32.mxu0 %vm122_vm1, %v7455_v16 }
0x108a   :  { %6692 = vmatprep.subr.mxu0 %v7042_v14 }
0x108c   :  { %6690 = vmatmul.mubr.msk.f32.vlgmr.msra.gmra.mrb[38].mxu0 %vm122_vm1, %v7457_v17 }
0x108d   :  { %6694 = vmatprep.mubr.msk.f32.mxu0 %vm7043_vm3, %v7042_v14 }
0x1157   :  { %v6681_v19 = vpop.f32.mrb[34].mxu0 }
0x1158   :  { %v3117_v20 = vpop.f32.mrb[35].mxu0  ;;  %v3123_v28 = vadd.f32 %v6681_v19, %v6150_v23 }
0x1159   :  { %v3118_v31 = vadd.f32 %v6150_v23, %v3117_v20  ;;  %v7566_v20 = vld [vmem:[%s7820_s1 + $0x8] sm:$0xff] }
0x115b   :  { %v6686_v22 = vpop.f32.mrb[36].mxu0 }
0x115c   :  { %v3205_v24 = vadd.f32 %v6686_v22, %v6154_v21  ;;  %v3199_v25 = vpop.f32.mrb[37].mxu0 }
0x115d   :  { %v3200_v26 = vadd.f32 %v6154_v21, %v3199_v25 }
0x115e   :  { %6698 = vmatpush3.xpose.msk.msra.mxu1 %vm371_vm4, %v3205_v24  ;;  %v7572_v24 = vld [vmem:[%s7820_s1] sm:$0xff] }
0x115f   :  { %v6691_v29 = vpop.f32.mrb[38].mxu0  ;;  %6693 = vmatpush3.xpose.msk.msra.mxu0 %vm371_vm4, %v3200_v26  ;;  %6707 = vmatprep.subr.mxu1 %v7042_v14 }
0x1160   :  { %v3287_v33 = vadd.f32 %v6691_v29, %v6158_v27  ;;  %v3281_v34 = vpop.f32.mrb[39].mxu0  ;;  %6702 = vmatprep.subr.mxu0 %v7042_v14 }
0x1161   :  { %v3282_v35 = vadd.f32 %v6158_v27, %v3281_v34  ;;  %6700 = vmatmul.mubr.msk.f32.vlgmr.msra.gmra.mrb[30].mxu1 %vm371_vm4, %v3123_v28 }
0x1162   :  { %6695 = vmatmul.mubr.msk.f32.vlgmr.msra.gmra.mrb[40].mxu0 %vm371_vm4, %v3118_v31  ;;  %6708 = vmatpush3.msra.mxu1 %v3287_v33 }
0x1163   :  { %6703 = vmatpush3.msra.mxu0 %v3282_v35  ;;  %6709 = vmatprep.mubr.msk.f32.mxu1 %vm7043_vm3, %v7042_v14 }
0x1164   :  { %6704 = vmatprep.mubr.msk.f32.mxu0 %vm7043_vm3, %v7042_v14  ;;  %6717 = vmatprep.subr.msk.mxu1 %vm122_vm1, %v6170_v12 }
0x1165   :  { %6712 = vmatprep.subr.msk.mxu0 %vm122_vm1, %v6169_v13 }
0x1234   :  { %v3438_v36 = vpop.f32.mrb[30].mxu1 }
0x1235   :  { %v3439_v37 = vadd.f32 %v3438_v36, %v7151_v30  ;;  %v3362_v38 = vpop.f32.mrb[40].mxu0  ;;  %v6701_v39 = vpop.f32.mrb[31].mxu1 }
0x1236   :  { %v3363_v40 = vadd.f32 %v3362_v38, %v7156_v32  ;;  %v6696_v41 = vpop.f32.mrb[41].mxu0 }
0x1237   :  { %v3445_v42 = vsel %vm371_vm4, %v3439_v37, -inf  ;;  %v6195_v41 = vld [vmem:[%s7819_s2 + $0xf0] sm:$0xff] }
0x1238   :  { %3446 = vmax.xlane.f32.xlu0 %v3445_v42  ;;  %v3442_v43 = vsel %vm371_vm4, %v3363_v40, -inf }
0x1239   :  { %3443 = vmax.xlane.f32.xlu1 %v3442_v43 }
0x12c5   :  { %v3447_v44 = vpop.xlane.xlu0 %3446 }
0x12c6   :  { %v3449_v45 = vsub.f32 %v3439_v37, %v3447_v44  ;;  %v3444_v46 = vpop.xlane.xlu1 %3443 }
0x12c7   :  { %v3448_v47 = vsub.f32 %v3363_v40, %v3444_v46 }
0x12c8   :  { %v3452_v48 = vmul.f32 1.442695, %v3449_v45 }
0x12c9   :  { %v3450_v49 = vmul.f32 1.442695, %v3448_v47 }
0x12ca   :  { %6996 = vpow2.f32 %v3452_v48  ;;  %v6196_v48 = vld [vmem:[%s7819_s2 + $0x110] sm:$0xff] }
0x12cb   :  { %6998 = vpow2.f32 %v3450_v49  ;;  %v6190_v49 = vld [vmem:[%s7819_s2 + $0x148] sm:$0xff] }
0x12d4   :  { %v6997_v30 = vpop.eup %6996 }
0x12d5   :  { %v6999_v50 = vpop.eup %6998  ;;  %v3457_v51 = vsel %vm371_vm4, %v6997_v30, 0.0 }
0x12d6   :  { %3458 = vadd.xlane.f32.xlu0 %v3457_v51  ;;  %v3454_v32 = vsel %vm371_vm4, %v6999_v50, 0.0 }
0x12d7   :  { %3455 = vadd.xlane.f32.xlu1 %v3454_v32 }
0x1363   :  { %v3459_v52 = vpop.xlane.xlu0 %3458 }
0x1364   :  { %7000 = vrcp.f32 %v3459_v52  ;;  %v3456_v53 = vpop.xlane.xlu1 %3455 }
0x1365   :  { %7002 = vrcp.f32 %v3456_v53 }
0x136e   :  { %v7001_v54 = vpop.eup %7000 }
0x136f   :  { %v7003_v55 = vpop.eup %7002  ;;  %v3463_v56 = vmul.f32 %v7001_v54, %v6997_v30  ;;  %v6168_v30 = vld [vmem:[%s7819_s2 + $0x140] sm:$0xff]  ;;  %v6202_v54 = vld [vmem:[%s7817_s3 + $0x6e] ss:$0 sm:$0xff] }
0x1370   :  { %v3461_v57 = vmul.f32 %v7003_v55, %v6999_v50 }
0x1371   :  { %6710 = vmatmul.mubr.msk.f32.vlgmr.msra.gmra.mrb[32].mxu1 %vm371_vm4, %v3463_v56 }
0x1372   :  { %6705 = vmatmul.mubr.msk.f32.vlgmr.msra.gmra.mrb[42].mxu0 %vm371_vm4, %v3461_v57  ;;  %6718 = vmatpush3.xpose.msk.msra.mxu1 %vm122_vm1, %v6170_v12 }
0x1373   :  { %6719 = vmatprep.mubr.msk.f32.mxu1 %vm122_vm1, %v7455_v16  ;;  %6713 = vmatpush3.xpose.msk.msra.mxu0 %vm122_vm1, %v6169_v13  ;;  %v6197_v13 = vld [vmem:[%s7819_s2 + $0x130] sm:$0xff] }
0x1374   :  { %6714 = vmatprep.mubr.msk.f32.mxu0 %vm122_vm1, %v7455_v16  ;;  %6722 = vmatprep.subr.msk.mxu0 %vm122_vm1, %v6171_v58 }
0x1375   :  { %6720 = vmatmul.mubr.msk.f32.vlgmr.msra.gmra.mrb[34].mxu1 %vm122_vm1, %v7457_v17  ;;  %6727 = vmatprep.subr.mxu1 %v7042_v14 }
0x1376   :  { %6715 = vmatmul.mubr.msk.f32.vlgmr.msra.gmra.mrb[44].mxu0 %vm122_vm1, %v7457_v17  ;;  %6729 = vmatprep.mubr.msk.f32.mxu1 %vm7043_vm3, %v7042_v14 }
0x1377   :  { %6723 = vmatpush3.xpose.msk.msra.mxu0 %vm122_vm1, %v6171_v58  ;;  %6724 = vmatprep.mubr.msk.f32.mxu0 %vm122_vm1, %v7455_v16  ;;  %v6198_v58 = vld [vmem:[%s7817_s3 + $0x6a] ss:$0 sm:$0xff] }
0x1378   :  { %6732 = vmatprep.subr.mxu0 %v7042_v14 }
0x137a   :  { %6725 = vmatmul.mubr.msk.f32.vlgmr.msra.gmra.mrb[46].mxu0 %vm122_vm1, %v7457_v17 }
0x137b   :  { %6734 = vmatprep.mubr.msk.f32.mxu0 %vm7043_vm3, %v7042_v14 }
0x1444   :  { %v7540_v60 = vpop.f32.mrb[32].mxu1 }
0x1445   :  { %v7542_v61 = vpop.f32.mrb[42].mxu0  ;;  %v6711_v59 = vpop.f32.mrb[33].mxu1 }
0x1446   :  { %v6706_v62 = vpop.f32.mrb[43].mxu0 }
0x1447   :  { %v6206_v62 = vld [vmem:[%s7817_s3 + $0x72] ss:$0 sm:$0xff] }
0x1448   :  { %v6721_v0 = vpop.f32.mrb[34].mxu1 }
0x1449   :  { %v3778_v1 = vadd.f32 %v6721_v0, %v6176_v63  ;;  %v6716_v2 = vpop.f32.mrb[44].mxu0  ;;  %v3772_v4 = vpop.f32.mrb[35].mxu1 }
0x144a   :  { %v3773_v5 = vadd.f32 %v6176_v63, %v3772_v4  ;;  %v3690_v6 = vpop.f32.mrb[45].mxu0  ;;  %v3696_v8 = vadd.f32 %v6716_v2, %v6172_v3 }
0x144b   :  { %6733 = vmatpush3.xpose.msk.msra.mxu0 %vm371_vm4, %v3778_v1  ;;  %v3691_v9 = vadd.f32 %v6172_v3, %v3690_v6 }
0x144c   :  { %6728 = vmatpush3.xpose.msk.msra.mxu1 %vm371_vm4, %v3773_v5  ;;  %6742 = vmatprep.subr.mxu0 %v7042_v14 }
0x144d   :  { %v6726_v10 = vpop.f32.mrb[46].mxu0  ;;  %6737 = vmatprep.subr.mxu1 %v7042_v14 }
0x144e   :  { %v3860_v11 = vadd.f32 %v6726_v10, %v6180_v7  ;;  %v3854_v15 = vpop.f32.mrb[47].mxu0  ;;  %6735 = vmatmul.mubr.msk.f32.vlgmr.msra.gmra.mrb[48].mxu0 %vm371_vm4, %v3696_v8 }
0x144f   :  { %v3855_v18 = vadd.f32 %v6180_v7, %v3854_v15  ;;  %6730 = vmatmul.mubr.msk.f32.vlgmr.msra.gmra.mrb[36].mxu1 %vm371_vm4, %v3691_v9  ;;  %6744 = vmatprep.mubr.msk.f32.mxu0 %vm7043_vm3, %v7042_v14 }
0x1450   :  { %6743 = vmatpush3.msra.mxu0 %v3860_v11  ;;  %6739 = vmatprep.mubr.msk.f32.mxu1 %vm7043_vm3, %v7042_v14 }
0x1451   :  { %6738 = vmatpush3.msra.mxu1 %v3855_v18  ;;  %6757 = vmatprep.subr.msk.mxu0 %vm122_vm1, %v6195_v41 }
0x1452   :  { %6747 = vmatprep.subr.mxu1 %v6190_v49 }
0x1521   :  { %v4011_v19 = vpop.f32.mrb[48].mxu0 }
0x1522   :  { %v4012_v21 = vadd.f32 %v7566_v20, %v4011_v19  ;;  %v3935_v22 = vpop.f32.mrb[36].mxu1  ;;  %v6736_v23 = vpop.f32.mrb[49].mxu0 }
0x1523   :  { %v3936_v25 = vadd.f32 %v7572_v24, %v3935_v22  ;;  %v6731_v26 = vpop.f32.mrb[37].mxu1 }
0x1524   :  { %v4018_v27 = vsel %vm371_vm4, %v4012_v21, -inf }
0x1525   :  { %4019 = vmax.xlane.f32.xlu0 %v4018_v27  ;;  %v4015_v28 = vsel %vm371_vm4, %v3936_v25, -inf }
0x1526   :  { %4016 = vmax.xlane.f32.xlu1 %v4015_v28  ;;  %v6219_v28 = vld [vmem:[%s7819_s2 + $0xf8] sm:$0xff] }
0x15b2   :  { %v4020_v29 = vpop.xlane.xlu0 %4019 }
0x15b3   :  { %v4022_v31 = vsub.f32 %v4012_v21, %v4020_v29  ;;  %v4017_v33 = vpop.xlane.xlu1 %4016  ;;  %v6216_v29 = vld [vmem:[%s7819_s2 + $0x150] sm:$0xff] }
0x15b4   :  { %v4021_v34 = vsub.f32 %v3936_v25, %v4017_v33 }
0x15b5   :  { %v4025_v35 = vmul.f32 1.442695, %v4022_v31 }
0x15b6   :  { %v4023_v36 = vmul.f32 1.442695, %v4021_v34 }
0x15b7   :  { %7004 = vpow2.f32 %v4025_v35 }
0x15b8   :  { %7006 = vpow2.f32 %v4023_v36  ;;  %v6220_v36 = vld [vmem:[%s7819_s2 + $0x118] sm:$0xff] }
0x15c1   :  { %v7005_v37 = vpop.eup %7004 }
0x15c2   :  { %v7007_v38 = vpop.eup %7006  ;;  %v4030_v39 = vsel %vm371_vm4, %v7005_v37, 0.0 }
0x15c3   :  { %4031 = vadd.xlane.f32.xlu0 %v4030_v39  ;;  %v4027_v40 = vsel %vm371_vm4, %v7007_v38, 0.0  ;;  %v6221_v39 = vld [vmem:[%s7819_s2 + $0x138] sm:$0xff] }
0x15c4   :  { %4028 = vadd.xlane.f32.xlu1 %v4027_v40 }
0x1650   :  { %v4032_v42 = vpop.xlane.xlu0 %4031 }
0x1651   :  { %7008 = vrcp.f32 %v4032_v42  ;;  %v4029_v43 = vpop.xlane.xlu1 %4028 }
0x1652   :  { %7010 = vrcp.f32 %v4029_v43 }
0x165b   :  { %v7009_v44 = vpop.eup %7008 }
0x165c   :  { %v7011_v45 = vpop.eup %7010  ;;  %v4036_v46 = vmul.f32 %v7009_v44, %v7005_v37 }
0x165d   :  { %v4034_v47 = vmul.f32 %v7011_v45, %v7007_v38 }
0x165e   :  { %6745 = vmatmul.mubr.msk.f32.vlgmr.msra.gmra.mrb[50].mxu0 %vm371_vm4, %v4036_v46  ;;  %v6226_v46 = vld [vmem:[%s7817_s3 + $0x6f] ss:$0 sm:$0xff] }
0x165f   :  { %6740 = vmatmul.mubr.msk.f32.vlgmr.msra.gmra.mrb[38].mxu1 %vm371_vm4, %v4034_v47  ;;  %6758 = vmatpush3.xpose.msk.msra.mxu0 %vm122_vm1, %v6195_v41 }
0x1660   :  { %6759 = vmatprep.mubr.msk.f32.mxu0 %vm122_vm1, %v7455_v16  ;;  %6762 = vmatprep.subr.msk.mxu0 %vm122_vm1, %v6196_v48 }
0x1661   :  { %6748 = vmatpush3.msra.mxu1 %v6190_v49 }
0x1662   :  { %6760 = vmatmul.mubr.msk.f32.vlgmr.msra.gmra.mrb[52].mxu0 %vm122_vm1, %v7457_v17  ;;  %6752 = vmatprep.subr.mxu1 %v6168_v30 }
0x1663   :  { %6763 = vmatpush3.xpose.msk.msra.mxu0 %vm122_vm1, %v6196_v48  ;;  %6764 = vmatprep.mubr.msk.f32.mxu0 %vm122_vm1, %v7455_v16  ;;  %v6222_v48 = vld [vmem:[%s7817_s3 + $0x6b] ss:$0 sm:$0xff] }
0x1664   :  { %6772 = vmatprep.subr.mxu0 %v7042_v14 }
0x1666   :  { %6765 = vmatmul.mubr.msk.f32.vlgmr.msra.gmra.mrb[54].mxu0 %vm122_vm1, %v7457_v17 }
0x1667   :  { %6774 = vmatprep.mubr.msk.f32.mxu0 %vm7043_vm3, %v7042_v14 }
0x1731   :  { %v4179_v50 = vpop.f32.mrb[50].mxu0 }
0x1732   :  { %v4106_v51 = vpop.f32.mrb[38].mxu1  ;;  %v6746_v32 = vpop.f32.mrb[51].mxu0 }
0x1733   :  { %v6741_v12 = vpop.f32.mrb[39].mxu1  ;;  %6749 = vmatprep.mubr.msk.f32.mxu1 %vm371_vm4, %v4106_v51 }
0x1734   :  { %6750 = vmatmul.mubr.msk.f32.vlgmr.msra.gmra.mrb[40].mxu1 %vm371_vm4, %v4179_v50  ;;  %v6230_v12 = vld [vmem:[%s7817_s3 + $0x73] ss:$0 sm:$0xff] }
0x1735   :  { %6753 = vmatpush3.msra.mxu1 %v6168_v30  ;;  %6754 = vmatprep.mubr.msk.f32.mxu1 %vm371_vm4, %v7542_v61  ;;  %v6761_v52 = vpop.f32.mrb[52].mxu0 }
0x1736   :  { %v4425_v53 = vpop.f32.mrb[53].mxu0  ;;  %6767 = vmatprep.subr.msk.mxu1 %vm122_vm1, %v6197_v13 }
0x1737   :  { %v4426_v61 = vadd.f32 %v6198_v58, %v4425_v53 }
0x1739   :  { %v6766_v55 = vpop.f32.mrb[54].mxu0 }
0x173a   :  { %v4507_v56 = vpop.f32.mrb[55].mxu0  ;;  %v4513_v59 = vadd.f32 %v6766_v55, %v6202_v54 }
0x173b   :  { %v4508_v57 = vadd.f32 %v6202_v54, %v4507_v56 }
0x173c   :  { %6755 = vmatmul.mubr.msk.f32.vlgmr.msra.gmra.mrb[40].mxu1 %vm371_vm4, %v7540_v60  ;;  %v4431_v60 = vadd.f32 %v6761_v52, %v6198_v58 }
0x173d   :  { %6768 = vmatpush3.xpose.msk.msra.mxu1 %vm122_vm1, %v6197_v13  ;;  %6769 = vmatprep.mubr.msk.f32.mxu1 %vm122_vm1, %v7455_v16 }
0x173e   :  { %6773 = vmatpush3.xpose.msk.msra.mxu0 %vm371_vm4, %v4508_v57  ;;  %6777 = vmatprep.subr.mxu1 %v7042_v14 }
0x173f   :  { %6782 = vmatprep.subr.mxu0 %v7042_v14 }
0x1740   :  { %6770 = vmatmul.mubr.msk.f32.vlgmr.msra.gmra.mrb[42].mxu1 %vm122_vm1, %v7457_v17 }
0x1741   :  { %6775 = vmatmul.mubr.msk.f32.vlgmr.msra.gmra.mrb[56].mxu0 %vm371_vm4, %v4426_v61  ;;  %6778 = vmatpush3.xpose.msk.msra.mxu1 %vm371_vm4, %v4513_v59 }
0x1742   :  { %6779 = vmatprep.mubr.msk.f32.mxu1 %vm7043_vm3, %v7042_v14  ;;  %6787 = vmatprep.subr.mxu1 %v7042_v14 }
0x1743   :  { %6784 = vmatprep.mubr.msk.f32.mxu0 %vm7043_vm3, %v7042_v14 }
0x1744   :  { %6780 = vmatmul.mubr.msk.f32.vlgmr.msra.gmra.mrb[44].mxu1 %vm371_vm4, %v4431_v60 }
0x1745   :  { %6789 = vmatprep.mubr.msk.f32.mxu1 %vm7043_vm3, %v7042_v14 }
0x1813   :  { %v6771_v63 = vpop.f32.mrb[42].mxu1 }
0x1814   :  { %v4595_v0 = vadd.f32 %v6771_v63, %v6206_v62  ;;  %v4670_v1 = vpop.f32.mrb[56].mxu0  ;;  %v4589_v2 = vpop.f32.mrb[43].mxu1 }
0x1815   :  { %v4671_v3 = vadd.f32 %v7572_v24, %v4670_v1  ;;  %v4590_v4 = vadd.f32 %v6206_v62, %v4589_v2  ;;  %v6776_v5 = vpop.f32.mrb[57].mxu0 }
0x1816   :  { %6788 = vmatpush3.msra.mxu1 %v4595_v0 }
0x1817   :  { %v4750_v6 = vsel %vm371_vm4, %v4671_v3, -inf  ;;  %v4746_v7 = vpop.f32.mrb[44].mxu1  ;;  %6783 = vmatpush3.msra.mxu0 %v4590_v4  ;;  %6792 = vmatprep.subr.mxu1 %v6216_v29 }
0x1818   :  { %4751 = vmax.xlane.f32.xlu0 %v4750_v6  ;;  %v4747_v8 = vadd.f32 %v7566_v20, %v4746_v7  ;;  %v6781_v9 = vpop.f32.mrb[45].mxu1  ;;  %6797 = vmatprep.subr.msk.mxu0 %vm122_vm1, %v6219_v28  ;;  %v6240_v6 = vld [vmem:[%s7819_s2 + $0x158] sm:$0xff] }
0x181a   :  { %v4753_v10 = vsel %vm371_vm4, %v4747_v8, -inf }
0x181b   :  { %4754 = vmax.xlane.f32.xlu1 %v4753_v10 }
0x18a5   :  { %v4752_v11 = vpop.xlane.xlu0 %4751 }
0x18a6   :  { %v4756_v15 = vsub.f32 %v4671_v3, %v4752_v11 }
0x18a8   :  { %v4758_v18 = vmul.f32 1.442695, %v4756_v15  ;;  %v4755_v19 = vpop.xlane.xlu1 %4754 }
0x18a9   :  { %v4757_v21 = vsub.f32 %v4747_v8, %v4755_v19 }
0x18aa   :  { %7012 = vpow2.f32 %v4758_v18 }
0x18ab   :  { %v4760_v22 = vmul.f32 1.442695, %v4757_v21 }
0x18ad   :  { %7014 = vpow2.f32 %v4760_v22 }
0x18b4   :  { %v7013_v23 = vpop.eup %7012 }
0x18b5   :  { %v4762_v25 = vsel %vm371_vm4, %v7013_v23, 0.0 }
0x18b6   :  { %4763 = vadd.xlane.f32.xlu0 %v4762_v25  ;;  %v6247_v25 = vld [vmem:[%s7819_s2 + $0x168] sm:$0xff] }
0x18b7   :  { %v7015_v26 = vpop.eup %7014 }
0x18b8   :  { %v4765_v27 = vsel %vm371_vm4, %v7015_v26, 0.0 }
0x18b9   :  { %4766 = vadd.xlane.f32.xlu1 %v4765_v27  ;;  %v6248_v27 = vld [vmem:[%s7819_s2 + $0x170] sm:$0xff] }
0x1943   :  { %v4764_v31 = vpop.xlane.xlu0 %4763 }
0x1944   :  { %7016 = vrcp.f32 %v4764_v31  ;;  %v6243_v31 = vld [vmem:[%s7817_s3 + $0x74] ss:$0 sm:$0xff] }
0x1946   :  { %v4767_v33 = vpop.xlane.xlu1 %4766 }
0x1947   :  { %7018 = vrcp.f32 %v4767_v33 }
0x194e   :  { %v7017_v34 = vpop.eup %7016 }
0x194f   :  { %v4769_v35 = vmul.f32 %v7017_v34, %v7013_v23  ;;  %v6246_v23 = vld [vmem:[%s7819_s2 + $0x160] sm:$0xff] }
0x1951   :  { %v7019_v37 = vpop.eup %7018  ;;  %6785 = vmatmul.mubr.msk.f32.vlgmr.msra.gmra.mrb[58].mxu0 %vm371_vm4, %v4769_v35 }
0x1952   :  { %v4771_v38 = vmul.f32 %v7019_v37, %v7015_v26  ;;  %6798 = vmatpush3.xpose.msk.msra.mxu0 %vm122_vm1, %v6219_v28  ;;  %6799 = vmatprep.mubr.msk.f32.mxu0 %vm122_vm1, %v7455_v16  ;;  %v6910_v26 = vpack.c.bf16 %v6247_v25, %v6246_v23  ;;  %v6249_v28 = vld [vmem:[%s7819_s2 + $0x178] sm:$0xff] }
0x1953   :  { %6802 = vmatprep.subr.msk.mxu0 %vm122_vm1, %v6220_v36 }
0x1954   :  { %6790 = vmatmul.mubr.msk.f32.vlgmr.msra.gmra.mrb[46].mxu1 %vm371_vm4, %v4771_v38 }
0x1955   :  { %6800 = vmatmul.mubr.msk.f32.vlgmr.msra.gmra.mrb[60].mxu0 %vm122_vm1, %v7457_v17  ;;  %6793 = vmatpush3.msra.mxu1 %v6216_v29  ;;  %v6914_v29 = vpack.c.bf16 %v6249_v28, %v6248_v27 }
0x1956   :  { %6803 = vmatpush3.xpose.msk.msra.mxu0 %vm122_vm1, %v6220_v36  ;;  %6804 = vmatprep.mubr.msk.f32.mxu0 %vm122_vm1, %v7455_v16 }
0x1957   :  { %6812 = vmatprep.subr.mxu0 %v7042_v14  ;;  %6807 = vmatprep.subr.msk.mxu1 %vm122_vm1, %v6221_v39 }
0x1959   :  { %6805 = vmatmul.mubr.msk.f32.vlgmr.msra.gmra.mrb[62].mxu0 %vm122_vm1, %v7457_v17 }
0x195a   :  { %6814 = vmatprep.mubr.msk.f32.mxu0 %vm7043_vm3, %v7042_v14 }
0x1a24   :  { %v4841_v40 = vpop.f32.mrb[58].mxu0 }
0x1a25   :  { %v6786_v41 = vpop.f32.mrb[59].mxu0  ;;  %6794 = vmatprep.mubr.msk.f32.mxu1 %vm371_vm4, %v4841_v40 }
0x1a27   :  { %v4914_v42 = vpop.f32.mrb[46].mxu1 }
0x1a28   :  { %v6801_v43 = vpop.f32.mrb[60].mxu0  ;;  %v6791_v44 = vpop.f32.mrb[47].mxu1  ;;  %6795 = vmatmul.mubr.msk.f32.vlgmr.msra.gmra.mrb[40].mxu1 %vm371_vm4, %v4914_v42 }
0x1a29   :  { %v5081_v45 = vpop.f32.mrb[61].mxu0  ;;  %6808 = vmatpush3.xpose.msk.msra.mxu1 %vm122_vm1, %v6221_v39  ;;  %6809 = vmatprep.mubr.msk.f32.mxu1 %vm122_vm1, %v7455_v16  ;;  %v5087_v51 = vadd.f32 %v6801_v43, %v6222_v48 }
0x1a2a   :  { %6817 = vmatprep.subr.mxu1 %v7042_v14  ;;  %v5082_v32 = vadd.f32 %v6222_v48, %v5081_v45 }
0x1a2c   :  { %v6806_v47 = vpop.f32.mrb[62].mxu0  ;;  %6810 = vmatmul.mubr.msk.f32.vlgmr.msra.gmra.mrb[48].mxu1 %vm122_vm1, %v7457_v17 }
0x1a2d   :  { %v5169_v49 = vadd.f32 %v6806_v47, %v6226_v46  ;;  %v5163_v30 = vpop.f32.mrb[63].mxu0  ;;  %6819 = vmatprep.mubr.msk.f32.mxu1 %vm7043_vm3, %v7042_v14 }
0x1a2e   :  { %v5164_v50 = vadd.f32 %v6226_v46, %v5163_v30 }
0x1a2f   :  { %6818 = vmatpush3.xpose.msk.msra.mxu1 %vm371_vm4, %v5169_v49 }
0x1a30   :  { %6813 = vmatpush3.xpose.msk.msra.mxu0 %vm371_vm4, %v5164_v50  ;;  %6827 = vmatprep.subr.mxu1 %v7042_v14 }
0x1a31   :  { %6822 = vmatprep.subr.mxu0 %v7042_v14 }
0x1a32   :  { %6820 = vmatmul.mubr.msk.f32.vlgmr.msra.gmra.mrb[50].mxu1 %vm371_vm4, %v5087_v51 }
0x1a33   :  { %6815 = vmatmul.mubr.msk.f32.vlgmr.msra.gmra.mrb[64].mxu0 %vm371_vm4, %v5082_v32  ;;  %6829 = vmatprep.mubr.msk.f32.mxu1 %vm7043_vm3, %v7042_v14 }
0x1a34   :  { %6824 = vmatprep.mubr.msk.f32.mxu0 %vm7043_vm3, %v7042_v14 }
0x1aff   :  { %v6811_v13 = vpop.f32.mrb[48].mxu1 }
0x1b00   :  { %v5251_v52 = vadd.f32 %v6811_v13, %v6230_v12  ;;  %v5245_v53 = vpop.f32.mrb[49].mxu1 }
0x1b01   :  { %v5246_v54 = vadd.f32 %v6230_v12, %v5245_v53 }
0x1b02   :  { %6828 = vmatpush3.msra.mxu1 %v5251_v52 }
0x1b03   :  { %6823 = vmatpush3.msra.mxu0 %v5246_v54  ;;  %6832 = vmatprep.subr.mxu1 %v6240_v6 }
0x1b04   :  { %6911 = vmatprep.subr.bf16.mxu0 %v6910_v26 }
0x1b05   :  { %v5402_v55 = vpop.f32.mrb[50].mxu1 }
0x1b06   :  { %v5403_v56 = vadd.f32 %v7566_v20, %v5402_v55  ;;  %v5326_v57 = vpop.f32.mrb[64].mxu0  ;;  %v6821_v58 = vpop.f32.mrb[51].mxu1 }
0x1b07   :  { %v5327_v61 = vadd.f32 %v7572_v24, %v5326_v57  ;;  %v6816_v59 = vpop.f32.mrb[65].mxu0 }
0x1b08   :  { %v5409_v14 = vsel %vm371_vm4, %v5403_v56, -inf }
0x1b09   :  { %5410 = vmax.xlane.f32.xlu1 %v5409_v14  ;;  %v5406_v60 = vsel %vm371_vm4, %v5327_v61, -inf }
0x1b0a   :  { %5407 = vmax.xlane.f32.xlu0 %v5406_v60  ;;  %v6245_v60 = vld [vmem:[%s7817_s3 + $0x78] ss:$0 sm:$0xff] }
0x1b96   :  { %v5411_v62 = vpop.xlane.xlu1 %5410 }
0x1b97   :  { %v5413_v63 = vsub.f32 %v5403_v56, %v5411_v62  ;;  %v5408_v0 = vpop.xlane.xlu0 %5407 }
0x1b98   :  { %v5412_v1 = vsub.f32 %v5327_v61, %v5408_v0  ;;  %v6244_v61 = vld [vmem:[%s7817_s3 + $0x77] ss:$0 sm:$0xff] }
0x1b99   :  { %v5416_v2 = vmul.f32 1.442695, %v5413_v63 }
0x1b9a   :  { %v5414_v3 = vmul.f32 1.442695, %v5412_v1 }
0x1b9b   :  { %7020 = vpow2.f32 %v5416_v2  ;;  %v6250_v2 = vld [vmem:[%s7819_s2 + $0x180] sm:$0xff] }
0x1b9c   :  { %7022 = vpow2.f32 %v5414_v3  ;;  %v6251_v3 = vld [vmem:[%s7819_s2 + $0x188] sm:$0xff] }
0x1ba5   :  { %v7021_v20 = vpop.eup %7020 }
0x1ba6   :  { %v7023_v4 = vpop.eup %7022  ;;  %v5421_v5 = vsel %vm371_vm4, %v7021_v20, 0.0 }
0x1ba7   :  { %5422 = vadd.xlane.f32.xlu1 %v5421_v5  ;;  %v5418_v24 = vsel %vm371_vm4, %v7023_v4, 0.0  ;;  %v6253_v5 = vld [vmem:[%s7819_s2 + $0x198] sm:$0xff] }
0x1ba8   :  { %5419 = vadd.xlane.f32.xlu0 %v5418_v24 }
0x1c34   :  { %v5423_v7 = vpop.xlane.xlu1 %5422 }
0x1c35   :  { %7024 = vrcp.f32 %v5423_v7  ;;  %v5420_v8 = vpop.xlane.xlu0 %5419  ;;  %v6255_v7 = vld [vmem:[%s7819_s2 + $0x1a8] sm:$0xff] }
0x1c36   :  { %7026 = vrcp.f32 %v5420_v8 }
0x1c3f   :  { %v7025_v9 = vpop.eup %7024 }
0x1c40   :  { %v7027_v10 = vpop.eup %7026  ;;  %v5427_v11 = vmul.f32 %v7025_v9, %v7021_v20  ;;  %v6918_v20 = vpack.c.bf16 %v6251_v3, %v6250_v2  ;;  %v6256_v9 = vld [vmem:[%s7819_s2 + $0x1b0] sm:$0xff] }
0x1c41   :  { %v5425_v15 = vmul.f32 %v7027_v10, %v7023_v4  ;;  %v6252_v4 = vld [vmem:[%s7819_s2 + $0x190] sm:$0xff]  ;;  %v6257_v10 = vld [vmem:[%s7819_s2 + $0x1b8] sm:$0xff] }
0x1c42   :  { %6830 = vmatmul.mubr.msk.f32.vlgmr.msra.gmra.mrb[52].mxu1 %vm371_vm4, %v5427_v11  ;;  %v6922_v24 = vpack.c.bf16 %v6253_v5, %v6252_v4  ;;  %v6930_v11 = vpack.c.bf16 %v6257_v10, %v6256_v9 }
0x1c43   :  { %6825 = vmatmul.mubr.msk.f32.vlgmr.msra.gmra.mrb[66].mxu0 %vm371_vm4, %v5425_v15  ;;  %6833 = vmatpush3.msra.mxu1 %v6240_v6  ;;  %v6254_v6 = vld [vmem:[%s7819_s2 + $0x1a0] sm:$0xff]  ;;  %v6258_v15 = vld [vmem:[%s7817_s3 + $0x75] ss:$0 sm:$0xff] }
0x1c44   :  { %6913 = vmatpush3.bf16.msra.mxu0 %v6910_v26  ;;  %6919 = vmatprep.subr.bf16.mxu1 %v6918_v20  ;;  %v6926_v8 = vpack.c.bf16 %v6255_v7, %v6254_v6 }
0x1c45   :  { %6915 = vmatprep.subr.bf16.mxu0 %v6914_v29 }
0x1c48   :  { %6917 = vmatpush3.bf16.msra.mxu0 %v6914_v29 }
0x1d15   :  { %v5570_v18 = vpop.f32.mrb[52].mxu1 }
0x1d16   :  { %v5497_v19 = vpop.f32.mrb[66].mxu0  ;;  %v6831_v21 = vpop.f32.mrb[53].mxu1 }
0x1d17   :  { %v6826_v22 = vpop.f32.mrb[67].mxu0  ;;  %6834 = vmatprep.mubr.msk.f32.mxu1 %vm371_vm4, %v5497_v19 }
0x1d18   :  { %6835 = vmatmul.mubr.msk.f32.vlgmr.msra.gmra.mrb[40].mxu1 %vm371_vm4, %v5570_v18 }
0x1d19   :  { %6921 = vmatpush3.bf16.msra.mxu1 %v6918_v20  ;;  %v6264_v20 = vld [vmem:[%s7817_s3 + $0x79] ss:$0 sm:$0xff] }
0x1d1a   :  { %6923 = vmatprep.subr.bf16.mxu1 %v6922_v24 }
0x1d1d   :  { %6925 = vmatpush3.bf16.msra.mxu1 %v6922_v24  ;;  %v6265_v24 = vld [vmem:[%s7817_s3 + $0x7a] ss:$0 sm:$0xff] }
0x1d1e   :  { %6927 = vmatprep.subr.bf16.mxu1 %v6926_v8 }
0x1d21   :  { %6929 = vmatpush3.bf16.msra.mxu1 %v6926_v8 }
0x1d22   :  { %6931 = vmatprep.subr.bf16.mxu1 %v6930_v11 }
0x1d25   :  { %6933 = vmatpush3.bf16.msra.mxu1 %v6930_v11 }
0x1deb   :  { %v6836_v33 = vpop.f32.mrb[40].mxu1 }
0x1dec   :  { %v5664_v34 = vadd.f32 %v6836_v33, %v6243_v31  ;;  %v5647_v35 = vpop.f32.mrb[41].mxu1 }
0x1ded   :  { %v5663_v36 = vadd.f32 %v6243_v31, %v5647_v35 }
0x1dee   :  { %v5666_v37 = vadd.f32 %v5664_v34, %v7457_v17 }
0x1def   :  { %v5665_v38 = vadd.f32 %v5663_v36, %v7455_v16  ;;  %v5957_v36 = vld [vmem:[%s7817_s3 + $0x28] sm:$0xff] }
0x1df0   :  { %v5670_v39 = vsel %vm122_vm1, %v5666_v37, 0.0 }
0x1df1   :  { %v5669_v40 = vsel %vm122_vm1, %v5665_v38, 0.0 }
0x1df2   :  { %v5671_v41 = vadd.f32 %v5670_v39, %v5669_v40  ;;  %v5960_v40 = vld [vmem:[%s7817_s3 + $0x40] sm:$0xff] }
0x1df4   :  { %v5672_v42 = vrot.slane %v5671_v41, 4 }
0x1df6   :  { %v5673_v43 = vadd.f32 %v5672_v42, %v5671_v41  ;;  %v6261_v42 = vld [vmem:[%s7817_s3 + $0x76] ss:$0 sm:$0xff] }
0x1df8   :  { %v5674_v44 = vrot.slane %v5673_v43, 2 }
0x1dfa   :  { %v5675_v45 = vadd.f32 %v5674_v44, %v5673_v43 }
0x1dfc   :  { %v5676_v46 = vrot.slane %v5675_v45, 1 }
0x1dfe   :  { %v5677_v47 = vadd.f32 %v5676_v46, %v5675_v45 }
0x1e00   :  { %v5678_v48 = vmul.f32 0.0625, %v5677_v47 }
0x1e02   :  { %v5679_v49 = vsub.f32 %v5665_v38, %v5678_v48  ;;  %v5680_v30 = vsub.f32 %v5666_v37, %v5678_v48  ;;  %v5958_v37 = vld [vmem:[%s7817_s3 + $0x30] sm:$0xff]  ;;  %v5959_v38 = vld [vmem:[%s7817_s3 + $0x38] sm:$0xff] }
0x1e03   :  { %v6934_v39 = vpack.c.bf16 %v5958_v37, %v5957_v36  ;;  %v6938_v41 = vpack.c.bf16 %v5960_v40, %v5959_v38 }
0x1e04   :  { %v5681_v50 = vmul.f32 %v5679_v49, %v5679_v49  ;;  %v5682_v51 = vmul.f32 %v5680_v30, %v5680_v30 }
0x1e05   :  { %6935 = vmatprep.subr.bf16.mxu0 %v6934_v39 }
0x1e06   :  { %v5683_v17 = vsel %vm122_vm1, %v5681_v50, 0.0  ;;  %v5684_v16 = vsel %vm122_vm1, %v5682_v51, 0.0 }
0x1e07   :  { %v5685_v32 = vadd.f32 %v5684_v16, %v5683_v17 }
0x1e09   :  { %v5686_v12 = vrot.slane %v5685_v32, 4 }
0x1e0b   :  { %v5687_v13 = vadd.f32 %v5686_v12, %v5685_v32 }
0x1e0d   :  { %v5688_v52 = vrot.slane %v5687_v13, 2 }
0x1e0f   :  { %v5689_v53 = vadd.f32 %v5688_v52, %v5687_v13 }
0x1e11   :  { %v5690_v54 = vrot.slane %v5689_v53, 1 }
0x1e13   :  { %v5691_v55 = vadd.f32 %v5690_v54, %v5689_v53 }
0x1e15   :  { %v5692_v56 = vmul.f32 0.0625, %v5691_v55 }
0x1e17   :  { %v5693_v57 = vadd.f32 1e-05, %v5692_v56 }
0x1e19   :  { %7028 = vrsqrt.f32 %v5693_v57 }
0x1e23   :  { %v7029_v58 = vpop.eup %7028 }
0x1e24   :  { %v5695_v59 = vmul.f32 %v7029_v58, %v5679_v49  ;;  %v5696_v14 = vmul.f32 %v7029_v58, %v5680_v30 }
0x1e26   :  { %v5701_v62 = vmul.f32 %v6244_v61, %v5695_v59  ;;  %v5702_v63 = vmul.f32 %v6244_v61, %v5696_v14 }
0x1e28   :  { %v5707_v0 = vadd.f32 %v6245_v60, %v5701_v62  ;;  %v5708_v1 = vadd.f32 %v6245_v60, %v5702_v63 }
0x1e2a   :  { %6845 = vmatprep.mubr.msk.f32.mxu0 %vm122_vm1, %v5707_v0 }
0x1e2b   :  { %6846 = vmatmul.mubr.msk.f32.vlgmr.msra.gmra.mrb[68].mxu0 %vm122_vm1, %v5708_v1 }
0x1e2c   :  { %6937 = vmatpush3.bf16.msra.mxu0 %v6934_v39 }
0x1e2d   :  { %6939 = vmatprep.subr.bf16.mxu0 %v6938_v41 }
0x1e30   :  { %6941 = vmatpush3.bf16.msra.mxu0 %v6938_v41 }
0x1efe   :  { %v6847_v18 = vpop.f32.mrb[68].mxu0 }
0x1eff   :  { %v5804_v19 = vadd.f32 %v6847_v18, %v6258_v15  ;;  %v5798_v21 = vpop.f32.mrb[69].mxu0 }
0x1f00   :  { %v5799_v22 = vadd.f32 %v6258_v15, %v5798_v21 }
0x1f01   :  { %v5810_v23 = vmul.f32 0.70710677, %v5804_v19  ;;  %v5808_v33 = vmul.f32 0.5, %v5804_v19 }
0x1f02   :  { %v5809_v25 = vmul.f32 0.70710677, %v5799_v22  ;;  %v5807_v29 = vmul.f32 0.5, %v5799_v22 }
0x1f03   :  { %7030 = verf.f32 %v5810_v23 }
0x1f04   :  { %7032 = verf.f32 %v5809_v25 }
0x1f0d   :  { %v7031_v26 = vpop.eup %7030 }
0x1f0e   :  { %v7033_v27 = vpop.eup %7032  ;;  %v5814_v28 = vadd.f32 1.0, %v7031_v26 }
0x1f0f   :  { %v5813_v31 = vadd.f32 1.0, %v7033_v27  ;;  %v6266_v27 = vld [vmem:[%s7817_s3 + $0x48] ss:$0 sm:$0xff] }
0x1f10   :  { %v5816_v35 = vmul.f32 %v5814_v28, %v5808_v33 }
0x1f11   :  { %v5815_v34 = vmul.f32 %v5813_v31, %v5807_v29 }
0x1f13   :  { %6864 = vmatprep.mubr.msk.f32.mxu1 %vm2905_vm5, %v5815_v34 }
0x1f14   :  { %6865 = vmatmul.mubr.msk.f32.vlgmr.msra.gmra.mrb[54].mxu1 %vm2905_vm5, %v5816_v35 }
0x1fe7   :  { %v6866_v43 = vpop.f32.mrb[54].mxu1 }
0x1fe8   :  { %v5900_v44 = vadd.f32 %v6866_v43, %v6261_v42  ;;  %v5894_v45 = vpop.f32.mrb[55].mxu1 }
0x1fe9   :  { %v5895_v46 = vadd.f32 %v6261_v42, %v5894_v45 }
0x1fea   :  { %v5904_v47 = vadd.f32 %v5900_v44, %v5708_v1 }
0x1feb   :  { %v5903_v48 = vadd.f32 %v5895_v46, %v5707_v0 }
0x1fec   :  { %v5908_v49 = vsel %vm122_vm1, %v5904_v47, 0.0 }
0x1fed   :  { %v5907_v30 = vsel %vm122_vm1, %v5903_v48, 0.0 }
0x1fee   :  { %v5909_v50 = vadd.f32 %v5908_v49, %v5907_v30 }
0x1ff0   :  { %v5910_v51 = vrot.slane %v5909_v50, 4 }
0x1ff2   :  { %v5911_v17 = vadd.f32 %v5910_v51, %v5909_v50 }
0x1ff4   :  { %v5912_v16 = vrot.slane %v5911_v17, 2 }
0x1ff6   :  { %v5913_v32 = vadd.f32 %v5912_v16, %v5911_v17 }
0x1ff8   :  { %v5914_v12 = vrot.slane %v5913_v32, 1 }
0x1ffa   :  { %v5915_v13 = vadd.f32 %v5914_v12, %v5913_v32 }
0x1ffc   :  { %v5916_v52 = vmul.f32 0.0625, %v5915_v13 }
0x1ffe   :  { %v5917_v53 = vsub.f32 %v5903_v48, %v5916_v52  ;;  %v5918_v54 = vsub.f32 %v5904_v47, %v5916_v52 }
0x2000   :  { %v5919_v55 = vmul.f32 %v5917_v53, %v5917_v53  ;;  %v5920_v56 = vmul.f32 %v5918_v54, %v5918_v54 }
0x2002   :  { %v5921_v57 = vsel %vm122_vm1, %v5919_v55, 0.0  ;;  %v5922_v58 = vsel %vm122_vm1, %v5920_v56, 0.0 }
0x2003   :  { %v5923_v61 = vadd.f32 %v5922_v58, %v5921_v57 }
0x2005   :  { %v5924_v59 = vrot.slane %v5923_v61, 4 }
0x2007   :  { %v5925_v14 = vadd.f32 %v5924_v59, %v5923_v61 }
0x2009   :  { %v5926_v60 = vrot.slane %v5925_v14, 2 }
0x200b   :  { %v5927_v62 = vadd.f32 %v5926_v60, %v5925_v14 }
0x200d   :  { %v5928_v63 = vrot.slane %v5927_v62, 1 }
0x200f   :  { %v5929_v0 = vadd.f32 %v5928_v63, %v5927_v62 }
0x2011   :  { %v5930_v1 = vmul.f32 0.0625, %v5929_v0 }
0x2013   :  { %v5931_v2 = vadd.f32 1e-05, %v5930_v1 }
0x2015   :  { %7034 = vrsqrt.f32 %v5931_v2 }
0x201f   :  { %v7035_v3 = vpop.eup %7034 }
0x2020   :  { %v5933_v4 = vmul.f32 %v7035_v3, %v5917_v53  ;;  %v5934_v5 = vmul.f32 %v7035_v3, %v5918_v54 }
0x2022   :  { %v5939_v6 = vmul.f32 %v6264_v20, %v5933_v4  ;;  %v5940_v7 = vmul.f32 %v6264_v20, %v5934_v5 }
0x2024   :  { %v5945_v8 = vadd.f32 %v6265_v24, %v5939_v6  ;;  %v5946_v9 = vadd.f32 %v6265_v24, %v5940_v7 }
0x2026   :  { %v5949_v10 = vmul.f32 0.70710677, %v5945_v8  ;;  %v5950_v11 = vmul.f32 0.70710677, %v5946_v9  ;;  %v5948_v19 = vmul.f32 0.5, %v5946_v9  ;;  %v5947_v22 = vmul.f32 0.5, %v5945_v8 }
0x2028   :  { %7036 = verf.f32 %v5950_v11 }
0x2029   :  { %7038 = verf.f32 %v5949_v10 }
0x2032   :  { %v7037_v15 = vpop.eup %7036 }
0x2033   :  { %v7039_v18 = vpop.eup %7038  ;;  %v5954_v21 = vadd.f32 1.0, %v7037_v15 }
0x2034   :  { %v5953_v23 = vadd.f32 1.0, %v7039_v18 }
0x2035   :  { %v5956_v25 = vmul.f32 %v5954_v21, %v5948_v19 }
0x2036   :  { %v5955_v26 = vmul.f32 %v5953_v23, %v5947_v22 }
0x2038   :  { %6875 = vmatprep.mubr.msk.f32.mxu0 %vm122_vm1, %v5955_v26 }
0x2039   :  { %6876 = vmatmul.mubr.msk.f32.vlgmr.msra.gmra.mrb[70].mxu0 %vm122_vm1, %v5956_v25 }
0x210c   :  { %v6877_v28 = vpop.f32.mrb[70].mxu0 }
0x210d   :  { %v6044_v29 = vadd.f32 %v6877_v28, %v6266_v27  ;;  %v6038_v31 = vpop.f32.mrb[71].mxu0 }
0x210e   :  { %v6039_v33 = vadd.f32 %v6266_v27, %v6038_v31 }
0x210f   :  { %6048 = vst [vmem:[%s7821_s4 + $0x8] sm:$0xff] %v6044_v29 }
0x2110   :  { %6047 = vst [vmem:[%s7821_s4] sm:$0xff] %v6039_v33 }

</bundles_post_ra>
